<compile_context>
chip_gen: v6e
topology: v6e:2x2x1
jax: 0.10.0
libtpu: 0.0.40
codegen_flags: <defaults>
</compile_context>

<pallas_src>
import functools

import jax
import jax.numpy as jnp
from jax.experimental import pallas as pl
from jax.experimental.pallas import tpu as pltpu

# ---------------- model hyper-parameters (small, consistent with the module) ----------------
N_NODES = 16          # graph nodes per modality
IN_CHANNELS = 8       # data.x feature dim
HIDDEN_DIM = 16       # hidden_dim (= per-head GAT dim and branch output dim)
GAT_HEADS = 4         # gat_heads
N_COMPONENTS = 8      # ICA n_components
OUT_CHANNELS = 4      # final class count
N_BRANCHES = 3        # ct / pet / fused


def _elu(v):
    # exp argument clamped so the unselected branch never produces inf.
    return jnp.where(v > 0, v, jnp.exp(jnp.minimum(v, 0.0)) - 1.0)


# ---------------- Pallas kernels ----------------
def branch_kernel(x_ref, gat_w_ref, asrc_ref, adst_ref, gat_b_ref,
                  emb_w_ref, emb_b_ref, g1_w_ref, g1_b_ref, g2_w_ref, g2_b_ref,
                  adj_ref, anorm_ref, o_ref, *, heads, head_dim):
    """One full GAT_GCN_Model branch, fused in a single kernel invocation."""
    x = x_ref[...]                                    # [N, Fin]
    adj = adj_ref[...]                                # [N, N], adj[i, j]=1 iff edge j->i (incl. self)
    a_norm = anorm_ref[...]                           # [N, N], D^-1/2 (A+I) D^-1/2

    # ---- GATConv (concat=True, LeakyReLU 0.2) + ELU ----
    h = jnp.dot(x, gat_w_ref[...], preferred_element_type=jnp.float32)       # [N, H*D]
    # Per-head attention logits for all heads via two MXU matmuls against
    # precomputed block-diagonal attention matrices: alpha[n, h] = <h_head, a_head>.
    alpha_src = jnp.dot(h, asrc_ref[...], preferred_element_type=jnp.float32)  # [N, H]
    alpha_dst = jnp.dot(h, adst_ref[...], preferred_element_type=jnp.float32)  # [N, H]

    neg = jnp.float32(-1e30)
    parts = []
    for hd in range(heads):                            # 4x unrolled; [16,16] tiles each
        a_d = alpha_dst[:, hd:hd + 1]                  # [N, 1]
        a_s = alpha_src[:, hd:hd + 1]                  # [N, 1]
        e = a_d + a_s.T                                # e[i, j] = dst_i + src_j
        e = jnp.where(e > 0, e, 0.2 * e)               # LeakyReLU(0.2)
        e = jnp.where(adj > 0, e, neg)                 # mask non-edges (self-loops keep rows alive)
        e = e - jnp.max(e, axis=1, keepdims=True)
        p = jnp.exp(e)
        p = p * pl.reciprocal(jnp.sum(p, axis=1, keepdims=True), approx=True)
        hh = h[:, hd * head_dim:(hd + 1) * head_dim]   # [N, D]
        parts.append(jnp.dot(p, hh, preferred_element_type=jnp.float32))
    gat = jnp.concatenate(parts, axis=1) + gat_b_ref[...]   # [N, H*D], bias broadcast once
    gat = _elu(gat)

    # ---- node_embedding Linear + ELU ----
    emb = jnp.dot(gat, emb_w_ref[...], preferred_element_type=jnp.float32) + emb_b_ref[...]
    emb = _elu(emb)

    # ---- GCN1 + ELU ----
    g1 = jnp.dot(a_norm,
                 jnp.dot(emb, g1_w_ref[...], preferred_element_type=jnp.float32),
                 preferred_element_type=jnp.float32) + g1_b_ref[...]
    g1 = _elu(g1)

    # ---- GCN2 (no activation) ----
    g2 = jnp.dot(a_norm,
                 jnp.dot(g1, g2_w_ref[...], preferred_element_type=jnp.float32),
                 preferred_element_type=jnp.float32) + g2_b_ref[...]

    o_ref[...] = g2                                    # single lane-dense store


def fusion_classifier_kernel(branch_ref, proj_ref, cls_w_ref, cls_b_ref, o_ref):
    """Concat branch outputs, ICA-style centering+projection, classifier, log_softmax."""
    b = branch_ref[...]                                          # [3, N, hidden]
    concat = jnp.concatenate([b[0], b[1], b[2]], axis=1)         # [N, 3*hidden]
    # TODO(synk): FastICA.fit_transform is an iterative, data-dependent sklearn algorithm with
    #             no clean Pallas equivalent; approximated by mean-centering + fixed projection.
    centered = concat - jnp.mean(concat, axis=0, keepdims=True)
    fused = jnp.dot(centered, proj_ref[...], preferred_element_type=jnp.float32)   # [N, NC]
    logits = jnp.dot(fused, cls_w_ref[...], preferred_element_type=jnp.float32) + cls_b_ref[...]
    z = logits - jnp.max(logits, axis=1, keepdims=True)
    lse = jnp.log(jnp.sum(jnp.exp(z), axis=1, keepdims=True))
    o_ref[...] = z - lse


# ---------------- pallas_call glue ----------------
def _stacked_spec(shape):
    """BlockSpec for a parameter stacked over branches: leading dim squeezed, whole array tile."""
    return pl.BlockSpec((None,) + tuple(shape), lambda b: (b,) + (0,) * len(shape))


def maml_gnn_forward(x_stack, adj, a_norm, bp, ica_proj, cls_w, cls_b):
    n = x_stack.shape[1]
    hd = HIDDEN_DIM
    hxd = GAT_HEADS * hd

    branch_out = pl.pallas_call(
        functools.partial(branch_kernel, heads=GAT_HEADS, head_dim=hd),
        out_shape=jax.ShapeDtypeStruct((N_BRANCHES, n, hd), jnp.float32),
        grid=(N_BRANCHES,),
        in_specs=[
            _stacked_spec((n, IN_CHANNELS)),      # x
            _stacked_spec((IN_CHANNELS, hxd)),    # gat_w
            _stacked_spec((hxd, GAT_HEADS)),      # att_src block matrix
            _stacked_spec((hxd, GAT_HEADS)),      # att_dst block matrix
            _stacked_spec((1, hxd)),              # gat_bias
            _stacked_spec((hxd, hd)),             # emb_w
            _stacked_spec((1, hd)),               # emb_b
            _stacked_spec((hd, hd)),              # gcn1_w
            _stacked_spec((1, hd)),               # gcn1_b
            _stacked_spec((hd, hd)),              # gcn2_w
            _stacked_spec((1, hd)),               # gcn2_b
            pl.BlockSpec((n, n), lambda b: (0, 0)),   # adj (shared)
            pl.BlockSpec((n, n), lambda b: (0, 0)),   # a_norm (shared)
        ],
        out_specs=_stacked_spec((n, hd)),
        compiler_params=pltpu.CompilerParams(
            dimension_semantics=("parallel",)),       # branches split across TCs on v7x
    )(x_stack, bp["gat_w"], bp["att_src_blk"], bp["att_dst_blk"], bp["gat_bias"],
      bp["emb_w"], bp["emb_b"], bp["gcn1_w"], bp["gcn1_b"], bp["gcn2_w"], bp["gcn2_b"],
      adj, a_norm)

    log_probs = pl.pallas_call(
        fusion_classifier_kernel,
        out_shape=jax.ShapeDtypeStruct((n, OUT_CHANNELS), jnp.float32),
        in_specs=[pl.BlockSpec(memory_space=pltpu.MemorySpace.VMEM)] * 4,
        out_specs=pl.BlockSpec(memory_space=pltpu.MemorySpace.VMEM),
    )(branch_out, ica_proj, cls_w, cls_b)
    return log_probs


# ---------------- deterministic parameter / input construction ----------------
def _att_block(att):
    """[H, D] attention vector -> [H*D, H] block-diagonal matrix so alpha = h @ blk."""
    h, d = att.shape
    eye = jnp.eye(h, dtype=att.dtype)
    return (att[:, :, None] * eye[:, None, :]).reshape(h * d, h)


def init_branch_params(key):
    ks = jax.random.split(key, 10)
    hd = HIDDEN_DIM
    return {
        "gat_w": 0.1 * jax.random.normal(ks[0], (IN_CHANNELS, GAT_HEADS * hd), jnp.float32),
        "att_src_blk": _att_block(0.1 * jax.random.normal(ks[1], (GAT_HEADS, hd), jnp.float32)),
        "att_dst_blk": _att_block(0.1 * jax.random.normal(ks[2], (GAT_HEADS, hd), jnp.float32)),
        "gat_bias": 0.1 * jax.random.normal(ks[3], (1, GAT_HEADS * hd), jnp.float32),
        "emb_w": 0.1 * jax.random.normal(ks[4], (GAT_HEADS * hd, hd), jnp.float32),
        "emb_b": 0.1 * jax.random.normal(ks[5], (1, hd), jnp.float32),
        "gcn1_w": 0.1 * jax.random.normal(ks[6], (hd, hd), jnp.float32),
        "gcn1_b": 0.1 * jax.random.normal(ks[7], (1, hd), jnp.float32),
        "gcn2_w": 0.1 * jax.random.normal(ks[8], (hd, hd), jnp.float32),
        "gcn2_b": 0.1 * jax.random.normal(ks[9], (1, hd), jnp.float32),
    }


def build_adjacency(n):
    """Ring graph + chords, symmetric, with self-loops (dense, float32)."""
    adj = jnp.zeros((n, n), jnp.float32)
    idx = jnp.arange(n)
    adj = adj.at[idx, (idx + 1) % n].set(1.0)
    adj = adj.at[(idx + 1) % n, idx].set(1.0)
    adj = adj.at[idx, (idx + 5) % n].set(1.0)
    adj = adj.at[(idx + 5) % n, idx].set(1.0)
    adj = adj.at[idx, idx].set(1.0)        # self loops (GAT & GCN both add them)
    return adj


def normalize_adjacency(adj):
    """D^{-1/2} (A+I) D^{-1/2}; adj already contains self-loops."""
    deg = jnp.sum(adj, axis=1, keepdims=True)
    dinv = 1.0 / jnp.sqrt(deg)
    return dinv * adj * dinv.T


if __name__ == "__main__":
    key = jax.random.PRNGKey(0)
    k_ct, k_pet, k_fused, k_ica, k_cls, kx1, kx2, kx3 = jax.random.split(key, 8)

    branch_list = [init_branch_params(k) for k in (k_ct, k_pet, k_fused)]
    branch_params = jax.tree.map(lambda *xs: jnp.stack(xs, axis=0), *branch_list)

    ica_proj = 0.1 * jax.random.normal(k_ica, (3 * HIDDEN_DIM, N_COMPONENTS), jnp.float32)
    cls_w = 0.1 * jax.random.normal(k_cls, (N_COMPONENTS, OUT_CHANNELS), jnp.float32)
    cls_b = jnp.zeros((1, OUT_CHANNELS), jnp.float32)

    ct_x = jax.random.normal(kx1, (N_NODES, IN_CHANNELS), jnp.float32)
    pet_x = jax.random.normal(kx2, (N_NODES, IN_CHANNELS), jnp.float32)
    fused_x = jax.random.normal(kx3, (N_NODES, IN_CHANNELS), jnp.float32)
    x_stack = jnp.stack([ct_x, pet_x, fused_x], axis=0)          # [3, N, Fin]

    adj = build_adjacency(N_NODES)
    a_norm = normalize_adjacency(adj)

    fwd = jax.jit(maml_gnn_forward)
    out = fwd(x_stack, adj, a_norm, branch_params, ica_proj, cls_w, cls_b)
    out = jax.block_until_ready(out)

    assert out.shape == (N_NODES, OUT_CHANNELS)
    # rows of log_softmax must exponentiate-sum to ~1
    assert bool(jnp.allclose(jnp.exp(out).sum(axis=1), 1.0, atol=1e-4))
    print("KERNEL_OK")
</pallas_src>

<mosaic_0001>
module attributes {stable_mosaic.version = 11 : i64} {
  func.func @branch_kernel(%arg0: i32, %arg1: memref<1x16x8xf32, #tpu.memory_space<vmem>>, %arg2: memref<1x8x64xf32, #tpu.memory_space<vmem>>, %arg3: memref<1x64x4xf32, #tpu.memory_space<vmem>>, %arg4: memref<1x64x4xf32, #tpu.memory_space<vmem>>, %arg5: memref<1x1x64xf32, #tpu.memory_space<vmem>>, %arg6: memref<1x64x16xf32, #tpu.memory_space<vmem>>, %arg7: memref<1x1x16xf32, #tpu.memory_space<vmem>>, %arg8: memref<1x16x16xf32, #tpu.memory_space<vmem>>, %arg9: memref<1x1x16xf32, #tpu.memory_space<vmem>>, %arg10: memref<1x16x16xf32, #tpu.memory_space<vmem>>, %arg11: memref<1x1x16xf32, #tpu.memory_space<vmem>>, %arg12: memref<16x16xf32, #tpu.memory_space<vmem>>, %arg13: memref<16x16xf32, #tpu.memory_space<vmem>>, %arg14: memref<1x16x16xf32, #tpu.memory_space<vmem>>) attributes {dimension_semantics = [#tpu.dimension_semantics<parallel>], iteration_bounds = array<i64: 3>, scalar_prefetch = 0 : i64, scratch_operands = 0 : i64, tpu.core_type = #tpu.core_type<tc>, window_params = [{transform_indices = @transform_0, window_bounds = array<i64: 1, 16, 8>}, {transform_indices = @transform_1, window_bounds = array<i64: 1, 8, 64>}, {transform_indices = @transform_2, window_bounds = array<i64: 1, 64, 4>}, {transform_indices = @transform_3, window_bounds = array<i64: 1, 64, 4>}, {transform_indices = @transform_4, window_bounds = array<i64: 1, 1, 64>}, {transform_indices = @transform_5, window_bounds = array<i64: 1, 64, 16>}, {transform_indices = @transform_6, window_bounds = array<i64: 1, 1, 16>}, {transform_indices = @transform_7, window_bounds = array<i64: 1, 16, 16>}, {transform_indices = @transform_8, window_bounds = array<i64: 1, 1, 16>}, {transform_indices = @transform_9, window_bounds = array<i64: 1, 16, 16>}, {transform_indices = @transform_10, window_bounds = array<i64: 1, 1, 16>}, {pipeline_mode = #tpu.pipeline_mode<synchronous>, transform_indices = @transform_11, window_bounds = array<i64: 16, 16>}, {pipeline_mode = #tpu.pipeline_mode<synchronous>, transform_indices = @transform_12, window_bounds = array<i64: 16, 16>}, {transform_indices = @transform_13, window_bounds = array<i64: 1, 16, 16>}]} {
    %c0 = arith.constant 0 : index
    %c0_0 = arith.constant 0 : index
    %c0_1 = arith.constant 0 : index
    %0 = vector.load %arg1[%c0, %c0_0, %c0_1] : memref<1x16x8xf32, #tpu.memory_space<vmem>>, vector<1x16x8xf32>
    %1 = vector.shape_cast %0 : vector<1x16x8xf32> to vector<16x8xf32>
    %c0_2 = arith.constant 0 : index
    %c0_3 = arith.constant 0 : index
    %2 = vector.load %arg12[%c0_2, %c0_3] : memref<16x16xf32, #tpu.memory_space<vmem>>, vector<16x16xf32>
    %c0_4 = arith.constant 0 : index
    %c0_5 = arith.constant 0 : index
    %3 = vector.load %arg13[%c0_4, %c0_5] : memref<16x16xf32, #tpu.memory_space<vmem>>, vector<16x16xf32>
    %c0_6 = arith.constant 0 : index
    %c0_7 = arith.constant 0 : index
    %c0_8 = arith.constant 0 : index
    %4 = vector.load %arg2[%c0_6, %c0_7, %c0_8] : memref<1x8x64xf32, #tpu.memory_space<vmem>>, vector<1x8x64xf32>
    %5 = vector.shape_cast %4 : vector<1x8x64xf32> to vector<8x64xf32>
    %cst = arith.constant dense<0.000000e+00> : vector<16x64xf32>
    %6 = tpu.matmul %1, %5, %cst {dimension_numbers = #tpu.dot_dimension_numbers<[1], [0], [0], [1], [0, 0, 1, 1], [], []>} : vector<16x8xf32>, vector<8x64xf32>, vector<16x64xf32> -> vector<16x64xf32>
    %c0_9 = arith.constant 0 : index
    %c0_10 = arith.constant 0 : index
    %c0_11 = arith.constant 0 : index
    %7 = vector.load %arg3[%c0_9, %c0_10, %c0_11] : memref<1x64x4xf32, #tpu.memory_space<vmem>>, vector<1x64x4xf32>
    %8 = vector.shape_cast %7 : vector<1x64x4xf32> to vector<64x4xf32>
    %cst_12 = arith.constant dense<0.000000e+00> : vector<16x4xf32>
    %9 = tpu.matmul %6, %8, %cst_12 {dimension_numbers = #tpu.dot_dimension_numbers<[1], [0], [0], [1], [0, 0, 1, 1], [], []>} : vector<16x64xf32>, vector<64x4xf32>, vector<16x4xf32> -> vector<16x4xf32>
    %c0_13 = arith.constant 0 : index
    %c0_14 = arith.constant 0 : index
    %c0_15 = arith.constant 0 : index
    %10 = vector.load %arg4[%c0_13, %c0_14, %c0_15] : memref<1x64x4xf32, #tpu.memory_space<vmem>>, vector<1x64x4xf32>
    %11 = vector.shape_cast %10 : vector<1x64x4xf32> to vector<64x4xf32>
    %cst_16 = arith.constant dense<0.000000e+00> : vector<16x4xf32>
    %12 = tpu.matmul %6, %11, %cst_16 {dimension_numbers = #tpu.dot_dimension_numbers<[1], [0], [0], [1], [0, 0, 1, 1], [], []>} : vector<16x64xf32>, vector<64x4xf32>, vector<16x4xf32> -> vector<16x4xf32>
    %13 = vector.extract_strided_slice %12 {offsets = [0, 0], sizes = [16, 1], strides = [1, 1]} : vector<16x4xf32> to vector<16x1xf32>
    %14 = vector.extract_strided_slice %9 {offsets = [0, 0], sizes = [16, 1], strides = [1, 1]} : vector<16x4xf32> to vector<16x1xf32>
    %15 = tpu.transpose %14, [1, 0] : vector<16x1xf32> -> vector<1x16xf32>
    %16 = vector.broadcast %13 : vector<16x1xf32> to vector<16x16xf32>
    %17 = vector.broadcast %15 : vector<1x16xf32> to vector<16x16xf32>
    %18 = arith.addf %16, %17 : vector<16x16xf32>
    %cst_17 = arith.constant 0.000000e+00 : f32
    %19 = vector.broadcast %cst_17 : f32 to vector<16x16xf32>
    %20 = arith.cmpf ogt, %18, %19 : vector<16x16xf32>
    %cst_18 = arith.constant 2.000000e-01 : f32
    %21 = vector.broadcast %cst_18 : f32 to vector<16x16xf32>
    %22 = arith.mulf %21, %18 : vector<16x16xf32>
    %23 = arith.select %20, %18, %22 : vector<16x16xi1>, vector<16x16xf32>
    %cst_19 = arith.constant 0.000000e+00 : f32
    %24 = vector.broadcast %cst_19 : f32 to vector<16x16xf32>
    %25 = arith.cmpf ogt, %2, %24 : vector<16x16xf32>
    %cst_20 = arith.constant -1.000000e+30 : f32
    %26 = vector.broadcast %cst_20 : f32 to vector<16x16xf32>
    %27 = arith.select %25, %23, %26 : vector<16x16xi1>, vector<16x16xf32>
    %cst_21 = arith.constant dense<0xFF800000> : vector<16xf32>
    %28 = vector.multi_reduction <maximumf>, %27, %cst_21 [1] : vector<16x16xf32> to vector<16xf32>
    %29 = vector.shape_cast %28 : vector<16xf32> to vector<16x1xf32>
    %30 = vector.broadcast %29 : vector<16x1xf32> to vector<16x16xf32>
    %31 = arith.subf %27, %30 : vector<16x16xf32>
    %32 = math.exp %31 : vector<16x16xf32>
    %cst_22 = arith.constant dense<0.000000e+00> : vector<16xf32>
    %33 = vector.multi_reduction <add>, %32, %cst_22 [1] : vector<16x16xf32> to vector<16xf32>
    %34 = vector.shape_cast %33 : vector<16xf32> to vector<16x1xf32>
    %35 = tpu.reciprocal %34 {approx = true} : vector<16x1xf32> -> vector<16x1xf32>
    %36 = vector.broadcast %35 : vector<16x1xf32> to vector<16x16xf32>
    %37 = arith.mulf %32, %36 : vector<16x16xf32>
    %38 = vector.extract_strided_slice %6 {offsets = [0, 0], sizes = [16, 16], strides = [1, 1]} : vector<16x64xf32> to vector<16x16xf32>
    %cst_23 = arith.constant dense<0.000000e+00> : vector<16x16xf32>
    %39 = tpu.matmul %37, %38, %cst_23 {dimension_numbers = #tpu.dot_dimension_numbers<[1], [0], [0], [1], [0, 0, 1, 1], [], []>} : vector<16x16xf32>, vector<16x16xf32>, vector<16x16xf32> -> vector<16x16xf32>
    %40 = vector.extract_strided_slice %12 {offsets = [0, 1], sizes = [16, 1], strides = [1, 1]} : vector<16x4xf32> to vector<16x1xf32>
    %41 = vector.extract_strided_slice %9 {offsets = [0, 1], sizes = [16, 1], strides = [1, 1]} : vector<16x4xf32> to vector<16x1xf32>
    %42 = tpu.transpose %41, [1, 0] : vector<16x1xf32> -> vector<1x16xf32>
    %43 = vector.broadcast %40 : vector<16x1xf32> to vector<16x16xf32>
    %44 = vector.broadcast %42 : vector<1x16xf32> to vector<16x16xf32>
    %45 = arith.addf %43, %44 : vector<16x16xf32>
    %cst_24 = arith.constant 0.000000e+00 : f32
    %46 = vector.broadcast %cst_24 : f32 to vector<16x16xf32>
    %47 = arith.cmpf ogt, %45, %46 : vector<16x16xf32>
    %cst_25 = arith.constant 2.000000e-01 : f32
    %48 = vector.broadcast %cst_25 : f32 to vector<16x16xf32>
    %49 = arith.mulf %48, %45 : vector<16x16xf32>
    %50 = arith.select %47, %45, %49 : vector<16x16xi1>, vector<16x16xf32>
    %cst_26 = arith.constant 0.000000e+00 : f32
    %51 = vector.broadcast %cst_26 : f32 to vector<16x16xf32>
    %52 = arith.cmpf ogt, %2, %51 : vector<16x16xf32>
    %cst_27 = arith.constant -1.000000e+30 : f32
    %53 = vector.broadcast %cst_27 : f32 to vector<16x16xf32>
    %54 = arith.select %52, %50, %53 : vector<16x16xi1>, vector<16x16xf32>
    %cst_28 = arith.constant dense<0xFF800000> : vector<16xf32>
    %55 = vector.multi_reduction <maximumf>, %54, %cst_28 [1] : vector<16x16xf32> to vector<16xf32>
    %56 = vector.shape_cast %55 : vector<16xf32> to vector<16x1xf32>
    %57 = vector.broadcast %56 : vector<16x1xf32> to vector<16x16xf32>
    %58 = arith.subf %54, %57 : vector<16x16xf32>
    %59 = math.exp %58 : vector<16x16xf32>
    %cst_29 = arith.constant dense<0.000000e+00> : vector<16xf32>
    %60 = vector.multi_reduction <add>, %59, %cst_29 [1] : vector<16x16xf32> to vector<16xf32>
    %61 = vector.shape_cast %60 : vector<16xf32> to vector<16x1xf32>
    %62 = tpu.reciprocal %61 {approx = true} : vector<16x1xf32> -> vector<16x1xf32>
    %63 = vector.broadcast %62 : vector<16x1xf32> to vector<16x16xf32>
    %64 = arith.mulf %59, %63 : vector<16x16xf32>
    %65 = vector.extract_strided_slice %6 {offsets = [0, 16], sizes = [16, 16], strides = [1, 1]} : vector<16x64xf32> to vector<16x16xf32>
    %cst_30 = arith.constant dense<0.000000e+00> : vector<16x16xf32>
    %66 = tpu.matmul %64, %65, %cst_30 {dimension_numbers = #tpu.dot_dimension_numbers<[1], [0], [0], [1], [0, 0, 1, 1], [], []>} : vector<16x16xf32>, vector<16x16xf32>, vector<16x16xf32> -> vector<16x16xf32>
    %67 = vector.extract_strided_slice %12 {offsets = [0, 2], sizes = [16, 1], strides = [1, 1]} : vector<16x4xf32> to vector<16x1xf32>
    %68 = vector.extract_strided_slice %9 {offsets = [0, 2], sizes = [16, 1], strides = [1, 1]} : vector<16x4xf32> to vector<16x1xf32>
    %69 = tpu.transpose %68, [1, 0] : vector<16x1xf32> -> vector<1x16xf32>
    %70 = vector.broadcast %67 : vector<16x1xf32> to vector<16x16xf32>
    %71 = vector.broadcast %69 : vector<1x16xf32> to vector<16x16xf32>
    %72 = arith.addf %70, %71 : vector<16x16xf32>
    %cst_31 = arith.constant 0.000000e+00 : f32
    %73 = vector.broadcast %cst_31 : f32 to vector<16x16xf32>
    %74 = arith.cmpf ogt, %72, %73 : vector<16x16xf32>
    %cst_32 = arith.constant 2.000000e-01 : f32
    %75 = vector.broadcast %cst_32 : f32 to vector<16x16xf32>
    %76 = arith.mulf %75, %72 : vector<16x16xf32>
    %77 = arith.select %74, %72, %76 : vector<16x16xi1>, vector<16x16xf32>
    %cst_33 = arith.constant 0.000000e+00 : f32
    %78 = vector.broadcast %cst_33 : f32 to vector<16x16xf32>
    %79 = arith.cmpf ogt, %2, %78 : vector<16x16xf32>
    %cst_34 = arith.constant -1.000000e+30 : f32
    %80 = vector.broadcast %cst_34 : f32 to vector<16x16xf32>
    %81 = arith.select %79, %77, %80 : vector<16x16xi1>, vector<16x16xf32>
    %cst_35 = arith.constant dense<0xFF800000> : vector<16xf32>
    %82 = vector.multi_reduction <maximumf>, %81, %cst_35 [1] : vector<16x16xf32> to vector<16xf32>
    %83 = vector.shape_cast %82 : vector<16xf32> to vector<16x1xf32>
    %84 = vector.broadcast %83 : vector<16x1xf32> to vector<16x16xf32>
    %85 = arith.subf %81, %84 : vector<16x16xf32>
    %86 = math.exp %85 : vector<16x16xf32>
    %cst_36 = arith.constant dense<0.000000e+00> : vector<16xf32>
    %87 = vector.multi_reduction <add>, %86, %cst_36 [1] : vector<16x16xf32> to vector<16xf32>
    %88 = vector.shape_cast %87 : vector<16xf32> to vector<16x1xf32>
    %89 = tpu.reciprocal %88 {approx = true} : vector<16x1xf32> -> vector<16x1xf32>
    %90 = vector.broadcast %89 : vector<16x1xf32> to vector<16x16xf32>
    %91 = arith.mulf %86, %90 : vector<16x16xf32>
    %92 = vector.extract_strided_slice %6 {offsets = [0, 32], sizes = [16, 16], strides = [1, 1]} : vector<16x64xf32> to vector<16x16xf32>
    %cst_37 = arith.constant dense<0.000000e+00> : vector<16x16xf32>
    %93 = tpu.matmul %91, %92, %cst_37 {dimension_numbers = #tpu.dot_dimension_numbers<[1], [0], [0], [1], [0, 0, 1, 1], [], []>} : vector<16x16xf32>, vector<16x16xf32>, vector<16x16xf32> -> vector<16x16xf32>
    %94 = vector.extract_strided_slice %12 {offsets = [0, 3], sizes = [16, 1], strides = [1, 1]} : vector<16x4xf32> to vector<16x1xf32>
    %95 = vector.extract_strided_slice %9 {offsets = [0, 3], sizes = [16, 1], strides = [1, 1]} : vector<16x4xf32> to vector<16x1xf32>
    %96 = tpu.transpose %95, [1, 0] : vector<16x1xf32> -> vector<1x16xf32>
    %97 = vector.broadcast %94 : vector<16x1xf32> to vector<16x16xf32>
    %98 = vector.broadcast %96 : vector<1x16xf32> to vector<16x16xf32>
    %99 = arith.addf %97, %98 : vector<16x16xf32>
    %cst_38 = arith.constant 0.000000e+00 : f32
    %100 = vector.broadcast %cst_38 : f32 to vector<16x16xf32>
    %101 = arith.cmpf ogt, %99, %100 : vector<16x16xf32>
    %cst_39 = arith.constant 2.000000e-01 : f32
    %102 = vector.broadcast %cst_39 : f32 to vector<16x16xf32>
    %103 = arith.mulf %102, %99 : vector<16x16xf32>
    %104 = arith.select %101, %99, %103 : vector<16x16xi1>, vector<16x16xf32>
    %cst_40 = arith.constant 0.000000e+00 : f32
    %105 = vector.broadcast %cst_40 : f32 to vector<16x16xf32>
    %106 = arith.cmpf ogt, %2, %105 : vector<16x16xf32>
    %cst_41 = arith.constant -1.000000e+30 : f32
    %107 = vector.broadcast %cst_41 : f32 to vector<16x16xf32>
    %108 = arith.select %106, %104, %107 : vector<16x16xi1>, vector<16x16xf32>
    %cst_42 = arith.constant dense<0xFF800000> : vector<16xf32>
    %109 = vector.multi_reduction <maximumf>, %108, %cst_42 [1] : vector<16x16xf32> to vector<16xf32>
    %110 = vector.shape_cast %109 : vector<16xf32> to vector<16x1xf32>
    %111 = vector.broadcast %110 : vector<16x1xf32> to vector<16x16xf32>
    %112 = arith.subf %108, %111 : vector<16x16xf32>
    %113 = math.exp %112 : vector<16x16xf32>
    %cst_43 = arith.constant dense<0.000000e+00> : vector<16xf32>
    %114 = vector.multi_reduction <add>, %113, %cst_43 [1] : vector<16x16xf32> to vector<16xf32>
    %115 = vector.shape_cast %114 : vector<16xf32> to vector<16x1xf32>
    %116 = tpu.reciprocal %115 {approx = true} : vector<16x1xf32> -> vector<16x1xf32>
    %117 = vector.broadcast %116 : vector<16x1xf32> to vector<16x16xf32>
    %118 = arith.mulf %113, %117 : vector<16x16xf32>
    %119 = vector.extract_strided_slice %6 {offsets = [0, 48], sizes = [16, 16], strides = [1, 1]} : vector<16x64xf32> to vector<16x16xf32>
    %cst_44 = arith.constant dense<0.000000e+00> : vector<16x16xf32>
    %120 = tpu.matmul %118, %119, %cst_44 {dimension_numbers = #tpu.dot_dimension_numbers<[1], [0], [0], [1], [0, 0, 1, 1], [], []>} : vector<16x16xf32>, vector<16x16xf32>, vector<16x16xf32> -> vector<16x16xf32>
    %121 = tpu.concatenate %39, %66, %93, %120 in 1 : vector<16x16xf32>, vector<16x16xf32>, vector<16x16xf32>, vector<16x16xf32> -> vector<16x64xf32>
    %c0_45 = arith.constant 0 : index
    %c0_46 = arith.constant 0 : index
    %c0_47 = arith.constant 0 : index
    %122 = vector.load %arg5[%c0_45, %c0_46, %c0_47] : memref<1x1x64xf32, #tpu.memory_space<vmem>>, vector<1x1x64xf32>
    %123 = vector.shape_cast %122 : vector<1x1x64xf32> to vector<1x64xf32>
    %124 = vector.broadcast %123 : vector<1x64xf32> to vector<16x64xf32>
    %125 = arith.addf %121, %124 : vector<16x64xf32>
    %cst_48 = arith.constant 0.000000e+00 : f32
    %126 = vector.broadcast %cst_48 : f32 to vector<16x64xf32>
    %127 = arith.cmpf ogt, %125, %126 : vector<16x64xf32>
    %cst_49 = arith.constant 0.000000e+00 : f32
    %128 = vector.broadcast %cst_49 : f32 to vector<16x64xf32>
    %129 = arith.minimumf %125, %128 : vector<16x64xf32>
    %130 = math.exp %129 : vector<16x64xf32>
    %cst_50 = arith.constant 1.000000e+00 : f32
    %131 = vector.broadcast %cst_50 : f32 to vector<16x64xf32>
    %132 = arith.subf %130, %131 : vector<16x64xf32>
    %133 = arith.select %127, %125, %132 : vector<16x64xi1>, vector<16x64xf32>
    %c0_51 = arith.constant 0 : index
    %c0_52 = arith.constant 0 : index
    %c0_53 = arith.constant 0 : index
    %134 = vector.load %arg6[%c0_51, %c0_52, %c0_53] : memref<1x64x16xf32, #tpu.memory_space<vmem>>, vector<1x64x16xf32>
    %135 = vector.shape_cast %134 : vector<1x64x16xf32> to vector<64x16xf32>
    %cst_54 = arith.constant dense<0.000000e+00> : vector<16x16xf32>
    %136 = tpu.matmul %133, %135, %cst_54 {dimension_numbers = #tpu.dot_dimension_numbers<[1], [0], [0], [1], [0, 0, 1, 1], [], []>} : vector<16x64xf32>, vector<64x16xf32>, vector<16x16xf32> -> vector<16x16xf32>
    %c0_55 = arith.constant 0 : index
    %c0_56 = arith.constant 0 : index
    %c0_57 = arith.constant 0 : index
    %137 = vector.load %arg7[%c0_55, %c0_56, %c0_57] : memref<1x1x16xf32, #tpu.memory_space<vmem>>, vector<1x1x16xf32>
    %138 = vector.shape_cast %137 : vector<1x1x16xf32> to vector<1x16xf32>
    %139 = vector.broadcast %138 : vector<1x16xf32> to vector<16x16xf32>
    %140 = arith.addf %136, %139 : vector<16x16xf32>
    %cst_58 = arith.constant 0.000000e+00 : f32
    %141 = vector.broadcast %cst_58 : f32 to vector<16x16xf32>
    %142 = arith.cmpf ogt, %140, %141 : vector<16x16xf32>
    %cst_59 = arith.constant 0.000000e+00 : f32
    %143 = vector.broadcast %cst_59 : f32 to vector<16x16xf32>
    %144 = arith.minimumf %140, %143 : vector<16x16xf32>
    %145 = math.exp %144 : vector<16x16xf32>
    %cst_60 = arith.constant 1.000000e+00 : f32
    %146 = vector.broadcast %cst_60 : f32 to vector<16x16xf32>
    %147 = arith.subf %145, %146 : vector<16x16xf32>
    %148 = arith.select %142, %140, %147 : vector<16x16xi1>, vector<16x16xf32>
    %c0_61 = arith.constant 0 : index
    %c0_62 = arith.constant 0 : index
    %c0_63 = arith.constant 0 : index
    %149 = vector.load %arg8[%c0_61, %c0_62, %c0_63] : memref<1x16x16xf32, #tpu.memory_space<vmem>>, vector<1x16x16xf32>
    %150 = vector.shape_cast %149 : vector<1x16x16xf32> to vector<16x16xf32>
    %cst_64 = arith.constant dense<0.000000e+00> : vector<16x16xf32>
    %151 = tpu.matmul %148, %150, %cst_64 {dimension_numbers = #tpu.dot_dimension_numbers<[1], [0], [0], [1], [0, 0, 1, 1], [], []>} : vector<16x16xf32>, vector<16x16xf32>, vector<16x16xf32> -> vector<16x16xf32>
    %cst_65 = arith.constant dense<0.000000e+00> : vector<16x16xf32>
    %152 = tpu.matmul %3, %151, %cst_65 {dimension_numbers = #tpu.dot_dimension_numbers<[1], [0], [0], [1], [0, 0, 1, 1], [], []>} : vector<16x16xf32>, vector<16x16xf32>, vector<16x16xf32> -> vector<16x16xf32>
    %c0_66 = arith.constant 0 : index
    %c0_67 = arith.constant 0 : index
    %c0_68 = arith.constant 0 : index
    %153 = vector.load %arg9[%c0_66, %c0_67, %c0_68] : memref<1x1x16xf32, #tpu.memory_space<vmem>>, vector<1x1x16xf32>
    %154 = vector.shape_cast %153 : vector<1x1x16xf32> to vector<1x16xf32>
    %155 = vector.broadcast %154 : vector<1x16xf32> to vector<16x16xf32>
    %156 = arith.addf %152, %155 : vector<16x16xf32>
    %cst_69 = arith.constant 0.000000e+00 : f32
    %157 = vector.broadcast %cst_69 : f32 to vector<16x16xf32>
    %158 = arith.cmpf ogt, %156, %157 : vector<16x16xf32>
    %cst_70 = arith.constant 0.000000e+00 : f32
    %159 = vector.broadcast %cst_70 : f32 to vector<16x16xf32>
    %160 = arith.minimumf %156, %159 : vector<16x16xf32>
    %161 = math.exp %160 : vector<16x16xf32>
    %cst_71 = arith.constant 1.000000e+00 : f32
    %162 = vector.broadcast %cst_71 : f32 to vector<16x16xf32>
    %163 = arith.subf %161, %162 : vector<16x16xf32>
    %164 = arith.select %158, %156, %163 : vector<16x16xi1>, vector<16x16xf32>
    %c0_72 = arith.constant 0 : index
    %c0_73 = arith.constant 0 : index
    %c0_74 = arith.constant 0 : index
    %165 = vector.load %arg10[%c0_72, %c0_73, %c0_74] : memref<1x16x16xf32, #tpu.memory_space<vmem>>, vector<1x16x16xf32>
    %166 = vector.shape_cast %165 : vector<1x16x16xf32> to vector<16x16xf32>
    %cst_75 = arith.constant dense<0.000000e+00> : vector<16x16xf32>
    %167 = tpu.matmul %164, %166, %cst_75 {dimension_numbers = #tpu.dot_dimension_numbers<[1], [0], [0], [1], [0, 0, 1, 1], [], []>} : vector<16x16xf32>, vector<16x16xf32>, vector<16x16xf32> -> vector<16x16xf32>
    %cst_76 = arith.constant dense<0.000000e+00> : vector<16x16xf32>
    %168 = tpu.matmul %3, %167, %cst_76 {dimension_numbers = #tpu.dot_dimension_numbers<[1], [0], [0], [1], [0, 0, 1, 1], [], []>} : vector<16x16xf32>, vector<16x16xf32>, vector<16x16xf32> -> vector<16x16xf32>
    %c0_77 = arith.constant 0 : index
    %c0_78 = arith.constant 0 : index
    %c0_79 = arith.constant 0 : index
    %169 = vector.load %arg11[%c0_77, %c0_78, %c0_79] : memref<1x1x16xf32, #tpu.memory_space<vmem>>, vector<1x1x16xf32>
    %170 = vector.shape_cast %169 : vector<1x1x16xf32> to vector<1x16xf32>
    %171 = vector.broadcast %170 : vector<1x16xf32> to vector<16x16xf32>
    %172 = arith.addf %168, %171 : vector<16x16xf32>
    %c0_80 = arith.constant 0 : index
    %c0_81 = arith.constant 0 : index
    %c0_82 = arith.constant 0 : index
    %173 = vector.load %arg14[%c0_80, %c0_81, %c0_82] : memref<1x16x16xf32, #tpu.memory_space<vmem>>, vector<1x16x16xf32>
    %174 = vector.shape_cast %173 : vector<1x16x16xf32> to vector<16x16xf32>
    %175 = vector.shape_cast %172 : vector<16x16xf32> to vector<1x16x16xf32>
    tpu.vector_store %arg14[%c0_80, %c0_81, %c0_82], %175 {strides = array<i32>} : memref<1x16x16xf32, #tpu.memory_space<vmem>>, vector<1x16x16xf32>,
    return
  }
  func.func @transform_0(%arg0: i32) -> (i32, i32, i32) {
    %c0_i32 = arith.constant 0 : i32
    %c0_i32_0 = arith.constant 0 : i32
    %c0_i32_1 = arith.constant 0 : i32
    return %arg0, %c0_i32, %c0_i32_0 : i32, i32, i32
  }
  func.func @transform_1(%arg0: i32) -> (i32, i32, i32) {
    %c0_i32 = arith.constant 0 : i32
    %c0_i32_0 = arith.constant 0 : i32
    %c0_i32_1 = arith.constant 0 : i32
    return %arg0, %c0_i32, %c0_i32_0 : i32, i32, i32
  }
  func.func @transform_2(%arg0: i32) -> (i32, i32, i32) {
    %c0_i32 = arith.constant 0 : i32
    %c0_i32_0 = arith.constant 0 : i32
    %c0_i32_1 = arith.constant 0 : i32
    return %arg0, %c0_i32, %c0_i32_0 : i32, i32, i32
  }
  func.func @transform_3(%arg0: i32) -> (i32, i32, i32) {
    %c0_i32 = arith.constant 0 : i32
    %c0_i32_0 = arith.constant 0 : i32
    %c0_i32_1 = arith.constant 0 : i32
    return %arg0, %c0_i32, %c0_i32_0 : i32, i32, i32
  }
  func.func @transform_4(%arg0: i32) -> (i32, i32, i32) {
    %c0_i32 = arith.constant 0 : i32
    %c0_i32_0 = arith.constant 0 : i32
    %c0_i32_1 = arith.constant 0 : i32
    return %arg0, %c0_i32, %c0_i32_0 : i32, i32, i32
  }
  func.func @transform_5(%arg0: i32) -> (i32, i32, i32) {
    %c0_i32 = arith.constant 0 : i32
    %c0_i32_0 = arith.constant 0 : i32
    %c0_i32_1 = arith.constant 0 : i32
    return %arg0, %c0_i32, %c0_i32_0 : i32, i32, i32
  }
  func.func @transform_6(%arg0: i32) -> (i32, i32, i32) {
    %c0_i32 = arith.constant 0 : i32
    %c0_i32_0 = arith.constant 0 : i32
    %c0_i32_1 = arith.constant 0 : i32
    return %arg0, %c0_i32, %c0_i32_0 : i32, i32, i32
  }
  func.func @transform_7(%arg0: i32) -> (i32, i32, i32) {
    %c0_i32 = arith.constant 0 : i32
    %c0_i32_0 = arith.constant 0 : i32
    %c0_i32_1 = arith.constant 0 : i32
    return %arg0, %c0_i32, %c0_i32_0 : i32, i32, i32
  }
  func.func @transform_8(%arg0: i32) -> (i32, i32, i32) {
    %c0_i32 = arith.constant 0 : i32
    %c0_i32_0 = arith.constant 0 : i32
    %c0_i32_1 = arith.constant 0 : i32
    return %arg0, %c0_i32, %c0_i32_0 : i32, i32, i32
  }
  func.func @transform_9(%arg0: i32) -> (i32, i32, i32) {
    %c0_i32 = arith.constant 0 : i32
    %c0_i32_0 = arith.constant 0 : i32
    %c0_i32_1 = arith.constant 0 : i32
    return %arg0, %c0_i32, %c0_i32_0 : i32, i32, i32
  }
  func.func @transform_10(%arg0: i32) -> (i32, i32, i32) {
    %c0_i32 = arith.constant 0 : i32
    %c0_i32_0 = arith.constant 0 : i32
    %c0_i32_1 = arith.constant 0 : i32
    return %arg0, %c0_i32, %c0_i32_0 : i32, i32, i32
  }
  func.func @transform_11(%arg0: i32) -> (i32, i32) {
    %c0_i32 = arith.constant 0 : i32
    %c0_i32_0 = arith.constant 0 : i32
    %c0_i32_1 = arith.constant 0 : i32
    return %c0_i32, %c0_i32_0 : i32, i32
  }
  func.func @transform_12(%arg0: i32) -> (i32, i32) {
    %c0_i32 = arith.constant 0 : i32
    %c0_i32_0 = arith.constant 0 : i32
    %c0_i32_1 = arith.constant 0 : i32
    return %c0_i32, %c0_i32_0 : i32, i32
  }
  func.func @transform_13(%arg0: i32) -> (i32, i32, i32) {
    %c0_i32 = arith.constant 0 : i32
    %c0_i32_0 = arith.constant 0 : i32
    %c0_i32_1 = arith.constant 0 : i32
    return %arg0, %c0_i32, %c0_i32_0 : i32, i32, i32
  }
}

module attributes {stable_mosaic.version = 11 : i64} {
  func.func @fusion_classifier_kernel(%arg0: memref<3x16x16xf32, #tpu.memory_space<vmem>>, %arg1: memref<48x8xf32, #tpu.memory_space<vmem>>, %arg2: memref<8x4xf32, #tpu.memory_space<vmem>>, %arg3: memref<1x4xf32, #tpu.memory_space<vmem>>, %arg4: memref<16x4xf32, #tpu.memory_space<vmem>>) attributes {dimension_semantics = [], scalar_prefetch = 0 : i64, scratch_operands = 0 : i64, tpu.core_type = #tpu.core_type<tc>} {
    %c0 = arith.constant 0 : index
    %c0_0 = arith.constant 0 : index
    %c0_1 = arith.constant 0 : index
    %0 = vector.load %arg0[%c0, %c0_0, %c0_1] : memref<3x16x16xf32, #tpu.memory_space<vmem>>, vector<3x16x16xf32>
    %1 = vector.extract_strided_slice %0 {offsets = [0, 0, 0], sizes = [1, 16, 16], strides = [1, 1, 1]} : vector<3x16x16xf32> to vector<1x16x16xf32>
    %2 = vector.shape_cast %1 : vector<1x16x16xf32> to vector<16x16xf32>
    %3 = vector.extract_strided_slice %0 {offsets = [1, 0, 0], sizes = [1, 16, 16], strides = [1, 1, 1]} : vector<3x16x16xf32> to vector<1x16x16xf32>
    %4 = vector.shape_cast %3 : vector<1x16x16xf32> to vector<16x16xf32>
    %5 = vector.extract_strided_slice %0 {offsets = [2, 0, 0], sizes = [1, 16, 16], strides = [1, 1, 1]} : vector<3x16x16xf32> to vector<1x16x16xf32>
    %6 = vector.shape_cast %5 : vector<1x16x16xf32> to vector<16x16xf32>
    %7 = tpu.concatenate %2, %4, %6 in 1 : vector<16x16xf32>, vector<16x16xf32>, vector<16x16xf32> -> vector<16x48xf32>
    %cst = arith.constant dense<0.000000e+00> : vector<48xf32>
    %8 = vector.multi_reduction <add>, %7, %cst [0] : vector<16x48xf32> to vector<48xf32>
    %9 = vector.shape_cast %8 : vector<48xf32> to vector<1x48xf32>
    %cst_2 = arith.constant 1.600000e+01 : f32
    %10 = vector.broadcast %cst_2 : f32 to vector<1x48xf32>
    %11 = arith.divf %9, %10 : vector<1x48xf32>
    %12 = vector.broadcast %11 : vector<1x48xf32> to vector<16x48xf32>
    %13 = arith.subf %7, %12 : vector<16x48xf32>
    %c0_3 = arith.constant 0 : index
    %c0_4 = arith.constant 0 : index
    %14 = vector.load %arg1[%c0_3, %c0_4] : memref<48x8xf32, #tpu.memory_space<vmem>>, vector<48x8xf32>
    %cst_5 = arith.constant dense<0.000000e+00> : vector<16x8xf32>
    %15 = tpu.matmul %13, %14, %cst_5 {dimension_numbers = #tpu.dot_dimension_numbers<[1], [0], [0], [1], [0, 0, 1, 1], [], []>} : vector<16x48xf32>, vector<48x8xf32>, vector<16x8xf32> -> vector<16x8xf32>
    %c0_6 = arith.constant 0 : index
    %c0_7 = arith.constant 0 : index
    %16 = vector.load %arg2[%c0_6, %c0_7] : memref<8x4xf32, #tpu.memory_space<vmem>>, vector<8x4xf32>
    %cst_8 = arith.constant dense<0.000000e+00> : vector<16x4xf32>
    %17 = tpu.matmul %15, %16, %cst_8 {dimension_numbers = #tpu.dot_dimension_numbers<[1], [0], [0], [1], [0, 0, 1, 1], [], []>} : vector<16x8xf32>, vector<8x4xf32>, vector<16x4xf32> -> vector<16x4xf32>
    %c0_9 = arith.constant 0 : index
    %c0_10 = arith.constant 0 : index
    %18 = vector.load %arg3[%c0_9, %c0_10] : memref<1x4xf32, #tpu.memory_space<vmem>>, vector<1x4xf32>
    %19 = vector.broadcast %18 : vector<1x4xf32> to vector<16x4xf32>
    %20 = arith.addf %17, %19 : vector<16x4xf32>
    %cst_11 = arith.constant dense<0xFF800000> : vector<16xf32>
    %21 = vector.multi_reduction <maximumf>, %20, %cst_11 [1] : vector<16x4xf32> to vector<16xf32>
    %22 = vector.shape_cast %21 : vector<16xf32> to vector<16x1xf32>
    %23 = vector.broadcast %22 : vector<16x1xf32> to vector<16x4xf32>
    %24 = arith.subf %20, %23 : vector<16x4xf32>
    %25 = math.exp %24 : vector<16x4xf32>
    %cst_12 = arith.constant dense<0.000000e+00> : vector<16xf32>
    %26 = vector.multi_reduction <add>, %25, %cst_12 [1] : vector<16x4xf32> to vector<16xf32>
    %27 = vector.shape_cast %26 : vector<16xf32> to vector<16x1xf32>
    %28 = math.log %27 : vector<16x1xf32>
    %29 = vector.broadcast %28 : vector<16x1xf32> to vector<16x4xf32>
    %30 = arith.subf %24, %29 : vector<16x4xf32>
    %c0_13 = arith.constant 0 : index
    %c0_14 = arith.constant 0 : index
    %31 = vector.load %arg4[%c0_13, %c0_14] : memref<16x4xf32, #tpu.memory_space<vmem>>, vector<16x4xf32>
    tpu.vector_store %arg4[%c0_13, %c0_14], %30 {strides = array<i32>} : memref<16x4xf32, #tpu.memory_space<vmem>>, vector<16x4xf32>,
    return
  }
}

</mosaic_0001>

<bundles_post_ra>
// kernel: maml_gnn_forward.3
= control target key start
LH: loop header
LB: loop body
LE: loop exit
PB: predicated region body
PF: predicated region fallthrough
CT: control target
= control target key end

     0   :  { %s313_s19 = smov 16   ;;  %s314_s20 = smov 32   ;;  %vm39_vm0 = vcmask 130048   ;;  %vm42_vm1 = vcmask 261120   ;;  %vm45_vm2 = vcmask 392192   ;;  %vm154_vm3 = vcmask 64512   ;;  %s398_s0 = inlined_call_operand.vmem [shape: f32[3,16,16], index: 0, kind: input, shape index: {}]   ;;  %s399_s1 = inlined_call_operand.vmem [shape: f32[48,8], index: 1, kind: input, shape index: {}]   ;;  %s400_s2 = inlined_call_operand.vmem [shape: f32[8,4], index: 2, kind: input, shape index: {}]   ;;  %s401_s3 = inlined_call_operand.vmem [shape: f32[1,4], index: 3, kind: input, shape index: {}]   ;;  %s402_s4 = inlined_call_operand.vmem [shape: f32[16,4], index: 4, kind: output, shape index: {}]  }
   0x1   :  { %v19_v0 = vld [vmem:[%s398_s0 + $0x10] sm:$0xff]  ;;  %v21_v1 = vld [vmem:[%s398_s0 + $0x20] sm:$0xff]  ;;  %v20_v2 = vld [vmem:[%s398_s0 + $0x18] sm:$0xff]  ;;  %vm236_vm4 = vcmask 31744  }
   0x2   :  { %25 = vrot.lane.b32.xlu0 %v19_v0, %s313_s19  ;;  %33 = vrot.lane.b32.xlu1 %v21_v1, %s314_s20  ;;  %v22_v3 = vld [vmem:[%s398_s0 + $0x28] sm:$0xff]  ;;  %v63_v5 = vld [vmem:[%s399_s1 + $0x20] sm:$0xff] }
   0x3   :  { %v64_v4 = vld [vmem:[%s399_s1 + $0x28] sm:$0xff]  ;;  %v62_v6 = vld [vmem:[%s399_s1 + $0x18] sm:$0xff]  ;;  %v61_v7 = vld [vmem:[%s399_s1 + $0x10] sm:$0xff] }
   0x4   :  { %283 = vmatprep.subr.mxu0 %v64_v4  ;;  %v60_v8 = vld [vmem:[%s399_s1 + $0x8] sm:$0xff]  ;;  %v59_v9 = vld [vmem:[%s399_s1] sm:$0xff] }
   0x5   :  { %284 = vmatpush3.msra.mxu0 %v64_v4  ;;  %v17_v10 = vld [vmem:[%s398_s0] sm:$0xff]  ;;  %v18_v14 = vld [vmem:[%s398_s0 + $0x8] sm:$0xff] }
   0x6   :  { %27 = vrot.lane.b32.xlu0 %v20_v2, %s313_s19  ;;  %35 = vrot.lane.b32.xlu1 %v22_v3, %s314_s20  ;;  %v146_v32 = vld [vmem:[%s400_s2] sm:$0xff] }
   0x7   :  { %285 = vmatprep.subr.mxu0 %v63_v5  ;;  %298 = vmatprep.subr.mxu1 %v146_v32  ;;  %v269_v35 = vld [vmem:[%s401_s3] ss:$0 sm:$0xff] }
   0x8   :  { %286 = vmatpush3.msra.mxu0 %v63_v5  ;;  %299 = vmatpush3.msra.mxu1 %v146_v32 }
   0x9   :  { %287 = vmatprep.subr.mxu0 %v62_v6 }
   0xa   :  { %288 = vmatpush3.msra.mxu0 %v62_v6 }
   0xb   :  { %289 = vmatprep.subr.mxu0 %v61_v7 }
   0xc   :  { %290 = vmatpush3.msra.mxu0 %v61_v7 }
   0xd   :  { %291 = vmatprep.subr.mxu0 %v60_v8 }
   0xe   :  { %292 = vmatpush3.msra.mxu0 %v60_v8 }
   0xf   :  { %293 = vmatprep.subr.mxu0 %v59_v9 }
  0x10   :  { %294 = vmatpush3.msra.mxu0 %v59_v9 }
  0x74   :  { %v26_v11 = vpop.permute.xlu0 %25  ;;  %v34_v12 = vpop.permute.xlu1 %33 }
  0x75   :  { %v40_v13 = vsel %vm39_vm0, %v17_v10, %v26_v11 }
  0x76   :  { %v43_v15 = vsel %vm42_vm1, %v40_v13, %v34_v12 }
  0x77   :  { %v46_v20 = vsel %vm45_vm2, %v43_v15, 0.0 }
  0x78   :  { %v28_v16 = vpop.permute.xlu0 %27  ;;  %v36_v17 = vpop.permute.xlu1 %35 }
  0x79   :  { %v41_v18 = vsel %vm39_vm0, %v18_v14, %v28_v16 }
  0x7a   :  { %v44_v19 = vsel %vm42_vm1, %v41_v18, %v36_v17 }
  0x7b   :  { %v47_v21 = vsel %vm45_vm2, %v44_v19, 0.0 }
  0x7c   :  { %v48_v22 = vadd.f32 %v47_v21, %v46_v20 }
  0x7e   :  { %v49_v23 = vrot.slane %v48_v22, 4 }
  0x80   :  { %v50_v24 = vadd.f32 %v49_v23, %v48_v22 }
  0x82   :  { %v51_v25 = vrot.slane %v50_v24, 2 }
  0x84   :  { %v52_v26 = vadd.f32 %v51_v25, %v50_v24 }
  0x86   :  { %v53_v27 = vrot.slane %v52_v26, 1 }
  0x88   :  { %v54_v28 = vadd.f32 %v53_v27, %v52_v26 }
  0x8a   :  { %v56_v29 = vmul.f32 0.0625, %v54_v28 }
  0x8c   :  { %v58_v30 = vsub.f32 %v44_v19, %v56_v29  ;;  %v57_v31 = vsub.f32 %v43_v15, %v56_v29 }
  0x8e   :  { %295 = vmatprep.mubr.msk.f32.mxu0 %vm45_vm2, %v57_v31 }
  0x8f   :  { %296 = vmatmul.mubr.msk.f32.vlgmr.msra.gmra.mxu0 %vm45_vm2, %v58_v30 }
 0x14f   :  { %v297_v33 = vpop.f32.mrf.mxu0 }
 0x151   :  { %v137_v34 = vpop.f32.mrf.mxu0 }
 0x152   :  { %300 = vmatprep.mubr.msk.f32.mxu1 %vm154_vm3, %v137_v34 }
 0x153   :  { %301 = vmatmul.mubr.msk.f32.vlgmr.msra.gmra.mxu1 %vm154_vm3, %v297_v33 }
 0x213   :  { %v302_v36 = vpop.f32.mrf.mxu1 }
 0x214   :  { %v233_v37 = vadd.f32 %v302_v36, %v269_v35 }
 0x215   :  { %v227_v38 = vpop.f32.mrf.mxu1 }
 0x216   :  { %v228_v39 = vadd.f32 %v269_v35, %v227_v38  ;;  %v240_v40 = vsel %vm236_vm4, %v233_v37, -inf }
 0x217   :  { %241 = vmax.xlane.f32.xlu1 %v240_v40 }
 0x218   :  { %v237_v41 = vsel %vm236_vm4, %v228_v39, -inf }
 0x219   :  { %238 = vmax.xlane.f32.xlu0 %v237_v41 }
 0x2a0   :  { %v242_v42 = vpop.xlane.xlu1 %241 }
 0x2a1   :  { %v244_v43 = vsub.f32 %v233_v37, %v242_v42 }
 0x2a2   :  { %v239_v44 = vpop.xlane.xlu0 %238 }
 0x2a3   :  { %v243_v45 = vsub.f32 %v228_v39, %v239_v44  ;;  %v247_v46 = vmul.f32 1.442695, %v244_v43 }
 0x2a5   :  { %v245_v47 = vmul.f32 1.442695, %v243_v45 }
 0x2a7   :  { %305 = vpow2.f32 %v245_v47 }
 0x2a8   :  { %307 = vpow2.f32 %v247_v46 }
 0x2b4   :  { %v306_v48 = vpop.eup %305 }
 0x2b5   :  { %v249_v49 = vsel %vm236_vm4, %v306_v48, 0.0  ;;  %v308_v50 = vpop.eup %307 }
 0x2b6   :  { %250 = vadd.xlane.f32.xlu0 %v249_v49  ;;  %v252_v51 = vsel %vm236_vm4, %v308_v50, 0.0 }
 0x2ba   :  { %253 = vadd.xlane.f32.xlu0 %v252_v51 }
 0x33f   :  { %v251_v52 = vpop.xlane.xlu0 %250 }
 0x340   :  { %309 = vlog2.f32 %v251_v52 }
 0x343   :  { %v254_v53 = vpop.xlane.xlu0 %253 }
 0x344   :  { %311 = vlog2.f32 %v254_v53 }
 0x34d   :  { %v310_v54 = vpop.eup %309 }
 0x34e   :  { %v256_v55 = vmul.f32 0.6931472, %v310_v54 }
 0x350   :  { %v259_v56 = vsub.f32 %v243_v45, %v256_v55 }
 0x351   :  { %v312_v57 = vpop.eup %311 }
 0x352   :  { %261 = vst.msk [vmem:[%s402_s4] sm:$0xff] %vm236_vm4, %v259_v56  ;;  %v258_v58 = vmul.f32 0.6931472, %v312_v57 }
 0x354   :  { %v260_v59 = vsub.f32 %v244_v43, %v258_v58 }
 0x356   :  { %262 = vst.msk [vmem:[%s402_s4 + $0x8] sm:$0xff] %vm236_vm4, %v260_v59 }

// kernel: maml_gnn_forward.2
= control target key start
LH: loop header
LB: loop body
LE: loop exit
PB: predicated region body
PF: predicated region fallthrough
CT: control target
= control target key end

     0   :  { %s2632_s25 = smov 0   ;;  %s2826_s0 = inlined_call_operand.vmem [shape: f32[3,16,8], index: 0, kind: input, shape index: {}]   ;;  %s2827_s1 = inlined_call_operand.vmem [shape: f32[3,8,64], index: 1, kind: input, shape index: {}]   ;;  %s2828_s2 = inlined_call_operand.vmem [shape: f32[3,64,4], index: 2, kind: input, shape index: {}]   ;;  %s2829_s3 = inlined_call_operand.vmem [shape: f32[3,64,4], index: 3, kind: input, shape index: {}]   ;;  %s2830_s4 = inlined_call_operand.vmem [shape: f32[3,1,64], index: 4, kind: input, shape index: {}]   ;;  %s2831_s5 = inlined_call_operand.vmem [shape: f32[3,64,16], index: 5, kind: input, shape index: {}]   ;;  %s2832_s6 = inlined_call_operand.vmem [shape: f32[3,1,16], index: 6, kind: input, shape index: {}]   ;;  %s2833_s7 = inlined_call_operand.vmem [shape: f32[3,16,16], index: 7, kind: input, shape index: {}]   ;;  %s2834_s8 = inlined_call_operand.vmem [shape: f32[3,1,16], index: 8, kind: input, shape index: {}]   ;;  %s2835_s9 = inlined_call_operand.vmem [shape: f32[3,16,16], index: 9, kind: input, shape index: {}]   ;;  %s2836_s10 = inlined_call_operand.vmem [shape: f32[3,1,16], index: 10, kind: input, shape index: {}]   ;;  %s2837_s11 = inlined_call_operand.vmem [shape: f32[16,16], index: 11, kind: input, shape index: {}]   ;;  %s2838_s12 = inlined_call_operand.vmem [shape: f32[16,16], index: 12, kind: input, shape index: {}]   ;;  %s2839_s13 = inlined_call_operand.vmem [shape: f32[3,16,16], index: 13, kind: output, shape index: {}]  }
   0x1 LB: > { %s2221_s26 = sadd.s32 4294967295, %s2547_s25   ;;  %p2225_p0 = scmp.ge.s32.totalorder %s2547_s25, 1  ;;  %s2547_s25 = sphi %s2632_s25, %s23_s25  }
   0x2   : > { %p478_p1 = scmp.lt.s32.totalorder %s2547_s25, 4 }
   0x4   : > { %p479_p2 = pnand %p2225_p0, %p478_p1 }
   0x5   : > { %p563_p3 = scmp.lt.s32.totalorder (!%p479_p2), %s2221_s26, 2  ;;  %s2552_s29 = smov (!%p479_p2), 127  }
   0x6   : > { %482 = sbr.rel (%p479_p2) target bundleno = 2366 (0x93e), region = 72  ;;  %s2553_s30 = smov (!%p479_p2), 126  }
   0x7   : > { %s2556_s19 = smov (!%p479_p2), 112   ;;  %s2557_s20 = smov (!%p479_p2), 96  }
   0x8   : > { %s2559_s22 = smov (!%p479_p2), 16   ;;  %s2560_s23 = smov (!%p479_p2), 32  }
   0xb   : > { %s2841_s26 = smov (!%p563_p3, %s2221_s26), 2  ;;  %vm621_vm0 = vcmask 64512   ;;  %vm711_vm1 = vcmask 523264   ;;  %v2549_v21 = vmov 0   ;;  %v2550_v22 = vmov 1   ;;  %v617_v46 = vld [vmem:[%s2837_s11 + $0x8] sm:$0xff] }
   0xc   : > { %s2228_s27 = sshll.u32 %s2841_s26, 3  ;;  %s2644_s28 = sshll.u32 %s2841_s26, 4  ;;  %2489 = vset.pattern.permute.xlu1 %v2549_v21  ;;  %2490 = vset.pattern.permute.xlu0 %v2550_v22  ;;  %v2554_v25 = vmov 2   ;;  %v2555_v27 = vmov 3   ;;  %v918_v39 = vlaneseq  ;;  %v2706_v47 = vld [vmem:[%s2837_s11] sm:$0xff]  ;;  %vm931_vm2 = vcmp.gt.f32.partialorder %v617_v46, 0.0 }
   0xd   : > { %s571_s14 = scalar_lea.vmem %s2827_s1, %s2228_s27  ;;  %s567_s17 = scalar_lea.vmem %s2826_s0, %s2644_s28  ;;  %vm930_vm3 = vcmp.gt.f32.partialorder %v2706_v47, 0.0  ;;  %vm934_vm6 = vcmask 130048   ;;  %vm1573_vm13 = vcmask 261120   ;;  %vm1576_vm14 = vcmask 392192  }
   0xe   : > { %v620_v0 = vld [vmem:[%s571_s14] sm:$0xff]  ;;  %v615_v2 = vld [vmem:[%s567_s17 + $0x8] sm:$0xff]  ;;  %s2654_s18 = sshll.u32 %s2841_s26, 6  ;;  %s2551_s27 = smov 125   ;;  %v919_v41 = vshrl.u32 %v918_v39, 7 }
   0xf   : > { %v614_v1 = vld [vmem:[%s567_s17] sm:$0xff]  ;;  %2349 = vmatprep.subr.mxu0 %v620_v0  ;;  %s2660_s21 = scalar_lea.vmem %s2828_s2, %s2654_s18  ;;  %s2666_s24 = scalar_lea.vmem %s2829_s3, %s2654_s18 }
  0x10   : > { %2351 = vmatprep.mubr.msk.f32.mxu0 %vm621_vm0, %v614_v1  ;;  %2350 = vmatpush3.msra.mxu0 %v620_v0  ;;  %v710_v3 = vld [vmem:[%s2660_s21 + $0x38] sm:$0xff]  ;;  %v709_v4 = vld [vmem:[%s2660_s21 + $0x30] sm:$0xff]  ;;  %v708_v7 = vld [vmem:[%s2660_s21 + $0x28] sm:$0xff]  ;;  %v920_v43 = vsub.s32 0, %v919_v41  ;;  %s584_s15 = scalar_lea.vmem %s2830_s4, %s2841_s26  ;;  %s605_s14 = scalar_lea.vmem %s2835_s9, %s2644_s28 }
  0x11   : > { %v800_v5 = vld [vmem:[%s2666_s24 + $0x38] sm:$0xff]  ;;  %2352 = vmatmul.mubr.msk.f32.vlgmr.msra.gmra.mxu0 %vm621_vm0, %v615_v2  ;;  %2354 = vmatprep.subr.mxu1 %v710_v3  ;;  %v799_v6 = vld [vmem:[%s2666_s24 + $0x30] sm:$0xff]  ;;  %v798_v8 = vld [vmem:[%s2666_s24 + $0x28] sm:$0xff]  ;;  %s600_s17 = scalar_lea.vmem %s2834_s8, %s2841_s26 }
  0x12   : > { %2355 = vmatpush3.msra.mxu1 %v710_v3  ;;  %2373 = vmatprep.subr.mxu0 %v800_v5  ;;  %v707_v9 = vld [vmem:[%s2660_s21 + $0x20] sm:$0xff]  ;;  %v706_v11 = vld [vmem:[%s2660_s21 + $0x18] sm:$0xff]  ;;  %v705_v13 = vld [vmem:[%s2660_s21 + $0x10] sm:$0xff] }
  0x13   : > { %2356 = vmatprep.subr.mxu1 %v709_v4  ;;  %2374 = vmatpush3.msra.mxu0 %v800_v5  ;;  %v797_v10 = vld [vmem:[%s2666_s24 + $0x20] sm:$0xff]  ;;  %v796_v12 = vld [vmem:[%s2666_s24 + $0x18] sm:$0xff]  ;;  %v795_v14 = vld [vmem:[%s2666_s24 + $0x10] sm:$0xff] }
  0x14   : > { %2357 = vmatpush3.msra.mxu1 %v709_v4  ;;  %2375 = vmatprep.subr.mxu0 %v799_v6  ;;  %v704_v15 = vld [vmem:[%s2660_s21 + $0x8] sm:$0xff]  ;;  %v703_v16 = vld [vmem:[%s2660_s21] sm:$0xff]  ;;  %s2558_s21 = smov 80  }
  0x15   : > { %2358 = vmatprep.subr.mxu1 %v708_v7  ;;  %2376 = vmatpush3.msra.mxu0 %v799_v6  ;;  %v794_v17 = vld [vmem:[%s2666_s24 + $0x8] sm:$0xff]  ;;  %v793_v18 = vld [vmem:[%s2666_s24] sm:$0xff]  ;;  %s613_s24 = scalar_lea.vmem %s2839_s13, %s2644_s28 }
  0x16   : > { %2359 = vmatpush3.msra.mxu1 %v708_v7  ;;  %2377 = vmatprep.subr.mxu0 %v798_v8 }
  0x17   : > { %2360 = vmatprep.subr.mxu1 %v707_v9  ;;  %2378 = vmatpush3.msra.mxu0 %v798_v8 }
  0x18   : > { %2361 = vmatpush3.msra.mxu1 %v707_v9  ;;  %2379 = vmatprep.subr.mxu0 %v797_v10 }
  0x19   : > { %2362 = vmatprep.subr.mxu1 %v706_v11  ;;  %2380 = vmatpush3.msra.mxu0 %v797_v10 }
  0x1a   : > { %2363 = vmatpush3.msra.mxu1 %v706_v11  ;;  %2381 = vmatprep.subr.mxu0 %v796_v12 }
  0x1b   : > { %2364 = vmatprep.subr.mxu1 %v705_v13  ;;  %2382 = vmatpush3.msra.mxu0 %v796_v12 }
  0x1c   : > { %2365 = vmatpush3.msra.mxu1 %v705_v13  ;;  %2383 = vmatprep.subr.mxu0 %v795_v14 }
  0x1d   : > { %2366 = vmatprep.subr.mxu1 %v704_v15  ;;  %2384 = vmatpush3.msra.mxu0 %v795_v14 }
  0x1e   : > { %2367 = vmatpush3.msra.mxu1 %v704_v15  ;;  %2385 = vmatprep.subr.mxu0 %v794_v17 }
  0x1f   : > { %2368 = vmatprep.subr.mxu1 %v703_v16  ;;  %2386 = vmatpush3.msra.mxu0 %v794_v17 }
  0x20   : > { %2369 = vmatpush3.msra.mxu1 %v703_v16  ;;  %2387 = vmatprep.subr.mxu0 %v793_v18 }
  0x21   : > { %2388 = vmatpush3.msra.mxu0 %v793_v18 }
  0xd1   : > { %v2684_v19 = vpop.f32.mrf.mxu0 }
  0xd2   : > { %2392 = vmatprep.subr.mxu1 %v2684_v19 }
  0xd3   : > { %v2687_v20 = vpop.f32.mrf.mxu0 }
  0xd4   : > { %2370 = vmatprep.mubr.msk.f32.mxu1 %vm711_vm1, %v2687_v20  ;;  %2389 = vmatprep.mubr.msk.f32.mxu0 %vm711_vm1, %v2687_v20 }
  0xd5   : > { %2371 = vmatmul.mubr.msk.f32.vlgmr.msra.gmra.mxu1 %vm711_vm1, %v2684_v19  ;;  %2390 = vmatmul.mubr.msk.f32.vlgmr.msra.gmra.mxu0 %vm711_vm1, %v2684_v19 }
  0xd6   : > { %2393 = vmatpush3.msra.mxu1 %v2684_v19 }
  0xd7   : > { %2394 = vmatprep.subr.mxu1 %v2687_v20 }
  0xd8   : > { %2395 = vmatpush3.msra.mxu1 %v2687_v20 }
 0x195   : > { %v2372_v23 = vpop.f32.mrf.mxu1  ;;  %v2391_v24 = vpop.f32.mrf.mxu0 }
 0x196   : > { %1380 = vrot.lane.b32.xlu1 %v2372_v23, %s2551_s27  ;;  %1042 = vrot.lane.b32.xlu0 %v2372_v23, %s2552_s29 }
 0x197   : > { %v784_v26 = vpop.f32.mrf.mxu1  ;;  %v867_v28 = vpop.f32.mrf.mxu0 }
 0x19a   : > { %915 = vperm.xlu1 %2489, %v2391_v24   ;;  %1211 = vrot.lane.b32.xlu0 %v2372_v23, %s2553_s30 }
 0x19e   : > { %2491 = vset.pattern.permute.xlu1 %v2554_v25  ;;  %1083 = vperm.xlu0 %2490, %v2391_v24  }
 0x19f   : > { %1252 = vperm.xlu1 %2491, %v2391_v24  }
 0x1a2   : > { %1040 = vrot.lane.b32.xlu0 %v784_v26, %s2552_s29  ;;  %s589_s29 = scalar_lea.vmem %s2831_s5, %s2654_s18 }
 0x1a3   : > { %2492 = vset.pattern.permute.xlu1 %v2555_v27  ;;  %2493 = vset.pattern.permute.xlu0 %v2549_v21 }
 0x1a4   : > { %1421 = vperm.xlu1 %2492, %v2391_v24  }
 0x1a6   : > { %910 = vperm.xlu0 %2493, %v867_v28  }
 0x1a8   : > { %1209 = vrot.lane.b32.xlu1 %v784_v26, %s2553_s30  ;;  %s2561_s30 = smov 48  }
 0x1a9   : > { %2494 = vset.pattern.permute.xlu1 %v2550_v22 }
 0x1aa   : > { %2496 = vset.pattern.permute.xlu0 %v2555_v27 }
 0x1ab   : > { %1417 = vperm.xlu0 %2496, %v867_v28  }
 0x1ac   : > { %1378 = vrot.lane.b32.xlu1 %v784_v26, %s2551_s27 }
 0x1b0   : > { %1079 = vperm.xlu1 %2494, %v867_v28  }
 0x1b4   : > { %2495 = vset.pattern.permute.xlu1 %v2554_v25 }
 0x1b5   : > { %1248 = vperm.xlu1 %2495, %v867_v28  }
 0x1de   : > { %876 = vxpose.xlu1.b32.start [1/2] (short) (narrow) %v784_v26, 8 }
 0x1e2   : > { %877 = vxpose.xlu1.b32.end [2/2] (short) (narrow) %v2372_v23, 8 }
 0x208   : > { %v1043_v29 = vpop.permute.xlu0 %1042  ;;  %v1381_v30 = vpop.permute.xlu1 %1380 }
 0x20c   : > { %v1212_v31 = vpop.permute.xlu0 %1211 }
 0x215   : > { %v916_v32 = vpop.permute.xlu1 %915 }
 0x219   : > { %v1084_v33 = vpop.permute.xlu0 %1083 }
 0x21a   : > { %v1253_v34 = vpop.permute.xlu1 %1252 }
 0x21d   : > { %v1041_v35 = vpop.permute.xlu0 %1040 }
 0x21e   : > { %1046 = vxpose.xlu0.b32.start [1/2] (short) (narrow) %v1041_v35, 8 }
 0x21f   : > { %v1422_v36 = vpop.permute.xlu1 %1421 }
 0x221   : > { %v911_v48 = vpop.permute.xlu0 %910 }
 0x222   : > { %1047 = vxpose.xlu0.b32.end [2/2] (short) (narrow) %v1043_v29, 8 }
 0x223   : > { %v1210_v37 = vpop.permute.xlu1 %1209 }
 0x226   : > { %1215 = vxpose.xlu0.b32.start [1/2] (short) (narrow) %v1210_v37, 8  ;;  %v1418_v59 = vpop.permute.xlu0 %1417 }
 0x227   : > { %v1379_v38 = vpop.permute.xlu1 %1378 }
 0x228   : > { %1384 = vxpose.xlu1.b32.start [1/2] (short) (narrow) %v1379_v38, 8 }
 0x22a   : > { %1216 = vxpose.xlu0.b32.end [2/2] (short) (narrow) %v1212_v31, 8 }
 0x22b   : > { %v1080_v40 = vpop.permute.xlu1 %1079 }
 0x22c   : > { %1385 = vxpose.xlu1.b32.end [2/2] (short) (narrow) %v1381_v30, 8 }
 0x230   : > { %v1249_v42 = vpop.permute.xlu1 %1248 }
 0x25a   : > { %v892_v44 = vpop.trf.xlu1 }
 0x25b   : > { %v921_v45 = vrot.slane %v892_v44, %v920_v43 }
 0x25d   : > { %v922_v49 = vadd.f32 %v921_v45, %v911_v48  ;;  %v923_v50 = vadd.f32 %v921_v45, %v916_v32 }
 0x25f   : > { %vm925_vm4 = vcmp.gt.f32.partialorder %v923_v50, 0.0  ;;  %v927_v51 = vmul.f32 0.2, %v923_v50  ;;  %vm924_vm5 = vcmp.gt.f32.partialorder %v922_v49, 0.0  ;;  %v926_v52 = vmul.f32 0.2, %v922_v49 }
 0x261   : > { %v929_v53 = vsel %vm925_vm4, %v923_v50, %v927_v51  ;;  %v928_v54 = vsel %vm924_vm5, %v922_v49, %v926_v52 }
 0x262   : > { %v2710_v55 = vsel %vm931_vm2, %v929_v53, -1e+30  ;;  %v2714_v56 = vsel %vm930_vm3, %v928_v54, -1e+30 }
 0x263   : > { %v938_v57 = vsel %vm934_vm6, %v2710_v55, -inf  ;;  %v935_v58 = vsel %vm934_vm6, %v2714_v56, -inf }
 0x264   : > { %939 = vmax.xlane.f32.xlu1 %v938_v57  ;;  %936 = vmax.xlane.f32.xlu0 %v935_v58 }
 0x29a   : > { %v1062_v60 = vpop.trf.xlu0 }
 0x29b   : > { %v1089_v61 = vrot.slane %v1062_v60, %v920_v43 }
 0x29d   : > { %v1090_v62 = vadd.f32 %v1089_v61, %v1080_v40  ;;  %v1091_v63 = vadd.f32 %v1089_v61, %v1084_v33 }
 0x29f   : > { %vm1093_vm7 = vcmp.gt.f32.partialorder %v1091_v63, 0.0  ;;  %v1095_v0 = vmul.f32 0.2, %v1091_v63  ;;  %vm1092_vm8 = vcmp.gt.f32.partialorder %v1090_v62, 0.0  ;;  %v1094_v1 = vmul.f32 0.2, %v1090_v62 }
 0x2a1   : > { %v1097_v2 = vsel %vm1093_vm7, %v1091_v63, %v1095_v0  ;;  %v1096_v3 = vsel %vm1092_vm8, %v1090_v62, %v1094_v1 }
 0x2a2   : > { %v1231_v4 = vpop.trf.xlu0  ;;  %v1099_v5 = vsel %vm931_vm2, %v1097_v2, -1e+30  ;;  %v1098_v6 = vsel %vm930_vm3, %v1096_v3, -1e+30 }
 0x2a3   : > { %v1258_v7 = vrot.slane %v1231_v4, %v920_v43  ;;  %v1103_v8 = vsel %vm934_vm6, %v1099_v5, -inf  ;;  %v1100_v9 = vsel %vm934_vm6, %v1098_v6, -inf }
 0x2a4   : > { %v1400_v10 = vpop.trf.xlu1  ;;  %1104 = vmax.xlane.f32.xlu1 %v1103_v8  ;;  %1101 = vmax.xlane.f32.xlu0 %v1100_v9 }
 0x2a5   : > { %v1259_v11 = vadd.f32 %v1258_v7, %v1249_v42  ;;  %v1260_v12 = vadd.f32 %v1258_v7, %v1253_v34  ;;  %v1427_v13 = vrot.slane %v1400_v10, %v920_v43 }
 0x2a7   : > { %v1428_v14 = vadd.f32 %v1427_v13, %v1418_v59  ;;  %v1429_v15 = vadd.f32 %v1427_v13, %v1422_v36  ;;  %vm1262_vm9 = vcmp.gt.f32.partialorder %v1260_v12, 0.0  ;;  %v1264_v16 = vmul.f32 0.2, %v1260_v12 }
 0x2a8   : > { %vm1261_vm10 = vcmp.gt.f32.partialorder %v1259_v11, 0.0  ;;  %v1263_v17 = vmul.f32 0.2, %v1259_v11 }
 0x2a9   : > { %v1266_v18 = vsel %vm1262_vm9, %v1260_v12, %v1264_v16  ;;  %vm1431_vm11 = vcmp.gt.f32.partialorder %v1429_v15, 0.0  ;;  %v1433_v21 = vmul.f32 0.2, %v1429_v15  ;;  %vm1430_vm12 = vcmp.gt.f32.partialorder %v1428_v14, 0.0 }
 0x2aa   : > { %v1268_v22 = vsel %vm931_vm2, %v1266_v18, -1e+30  ;;  %v1265_v23 = vsel %vm1261_vm10, %v1259_v11, %v1263_v17  ;;  %v1432_v24 = vmul.f32 0.2, %v1428_v14 }
 0x2ab   : > { %v1272_v25 = vsel %vm934_vm6, %v1268_v22, -inf  ;;  %v1267_v26 = vsel %vm930_vm3, %v1265_v23, -1e+30  ;;  %v1435_v27 = vsel %vm1431_vm11, %v1429_v15, %v1433_v21 }
 0x2ac   : > { %1273 = vmax.xlane.f32.xlu1 %v1272_v25  ;;  %v1269_v28 = vsel %vm934_vm6, %v1267_v26, -inf  ;;  %v1437_v29 = vsel %vm931_vm2, %v1435_v27, -1e+30  ;;  %v1434_v30 = vsel %vm1430_vm12, %v1428_v14, %v1432_v24 }
 0x2ad   : > { %1270 = vmax.xlane.f32.xlu0 %v1269_v28  ;;  %v1436_v31 = vsel %vm930_vm3, %v1434_v30, -1e+30  ;;  %v1441_v32 = vsel %vm934_vm6, %v1437_v29, -inf }
 0x2ae   : > { %v1438_v33 = vsel %vm934_vm6, %v1436_v31, -inf }
 0x2b0   : > { %1442 = vmax.xlane.f32.xlu1 %v1441_v32 }
 0x2b1   : > { %1439 = vmax.xlane.f32.xlu0 %v1438_v33 }
 0x2c1   : > { %1122 = vrot.lane.b32.xlu1 %v2687_v20, %s2556_s19 }
 0x2c5   : > { %1293 = vrot.lane.b32.xlu1 %v2684_v19, %s2557_s20 }
 0x2c7   : > { %1124 = vrot.lane.b32.xlu0 %v2684_v19, %s2556_s19  ;;  %s597_s19 = scalar_lea.vmem %s2833_s7, %s2644_s28 }
 0x2cb   : > { %1462 = vrot.lane.b32.xlu0 %v2684_v19, %s2558_s21 }
 0x2ed   : > { %v940_v34 = vpop.xlane.xlu1 %939  ;;  %v937_v35 = vpop.xlane.xlu0 %936 }
 0x2ee   : > { %v942_v36 = vsub.f32 %v2710_v55, %v940_v34  ;;  %v941_v37 = vsub.f32 %v2714_v56, %v937_v35 }
 0x2f0   : > { %v945_v38 = vmul.f32 1.442695, %v942_v36  ;;  %v943_v39 = vmul.f32 1.442695, %v941_v37 }
 0x2f2   : > { %2497 = vpow2.f32 %v945_v38 }
 0x2f3   : > { %2499 = vpow2.f32 %v943_v39 }
 0x2ff   : > { %v2743_v40 = vpop.eup %2497 }
 0x300   : > { %v2745_v41 = vpop.eup %2499  ;;  %v950_v42 = vsel %vm934_vm6, %v2743_v40, 0.0 }
 0x301   : > { %951 = vadd.xlane.f32.xlu1 %v950_v42  ;;  %v947_v19 = vsel %vm934_vm6, %v2745_v41, 0.0 }
 0x302   : > { %948 = vadd.xlane.f32.xlu0 %v947_v19 }
 0x32d   : > { %v1105_v43 = vpop.xlane.xlu1 %1104  ;;  %v1102_v44 = vpop.xlane.xlu0 %1101 }
 0x32e   : > { %v1107_v45 = vsub.f32 %v1099_v5, %v1105_v43  ;;  %v1106_v46 = vsub.f32 %v1098_v6, %v1102_v44 }
 0x330   : > { %v1110_v47 = vmul.f32 1.442695, %v1107_v45  ;;  %v1108_v48 = vmul.f32 1.442695, %v1106_v46  ;;  %v1607_v45 = vld [vmem:[%s589_s29 + $0x38] sm:$0xff]  ;;  %v1606_v46 = vld [vmem:[%s589_s29 + $0x30] sm:$0xff] }
 0x332   : > { %2501 = vpow2.f32 %v1110_v47 }
 0x333   : > { %2503 = vpow2.f32 %v1108_v48  ;;  %v1605_v48 = vld [vmem:[%s589_s29 + $0x28] sm:$0xff] }
 0x335   : > { %v1274_v49 = vpop.xlane.xlu1 %1273 }
 0x336   : > { %v1276_v50 = vsub.f32 %v1268_v22, %v1274_v49  ;;  %v1271_v51 = vpop.xlane.xlu0 %1270 }
 0x337   : > { %v1275_v52 = vsub.f32 %v1267_v26, %v1271_v51  ;;  %v1603_v51 = vld [vmem:[%s589_s29 + $0x18] sm:$0xff] }
 0x338   : > { %v1279_v53 = vmul.f32 1.442695, %v1276_v50  ;;  %v1604_v50 = vld [vmem:[%s589_s29 + $0x20] sm:$0xff] }
 0x339   : > { %v1277_v54 = vmul.f32 1.442695, %v1275_v52  ;;  %v1443_v55 = vpop.xlane.xlu1 %1442  ;;  %v1602_v52 = vld [vmem:[%s589_s29 + $0x10] sm:$0xff] }
 0x33a   : > { %2505 = vpow2.f32 %v1279_v53  ;;  %v1445_v56 = vsub.f32 %v1437_v29, %v1443_v55  ;;  %v1440_v57 = vpop.xlane.xlu0 %1439  ;;  %v1601_v53 = vld [vmem:[%s589_s29 + $0x8] sm:$0xff] }
 0x33b   : > { %2507 = vpow2.f32 %v1277_v54  ;;  %v1444_v58 = vsub.f32 %v1436_v31, %v1440_v57  ;;  %v1600_v54 = vld [vmem:[%s589_s29] sm:$0xff] }
 0x33c   : > { %v1448_v59 = vmul.f32 1.442695, %v1445_v56 }
 0x33d   : > { %v1446_v60 = vmul.f32 1.442695, %v1444_v58  ;;  %v1123_v61 = vpop.permute.xlu1 %1122 }
 0x33e   : > { %2509 = vpow2.f32 %v1448_v59  ;;  %v1125_v62 = vpop.permute.xlu0 %1124 }
 0x33f   : > { %v2502_v63 = vpop.eup %2501  ;;  %2511 = vpow2.f32 %v1446_v60  ;;  %2399 = vmatprep.subr.mxu0 %v1125_v62  ;;  %v2255_v60 = vld [vmem:[%s584_s15] ss:$0 sm:$0xff] }
 0x340   : > { %v2504_v0 = vpop.eup %2503  ;;  %2400 = vmatpush3.msra.mxu0 %v1125_v62  ;;  %v1115_v1 = vsel %vm934_vm6, %v2502_v63, 0.0 }
 0x341   : > { %2401 = vmatprep.subr.mxu0 %v1123_v61  ;;  %1116 = vadd.xlane.f32.xlu1 %v1115_v1  ;;  %v1294_v2 = vpop.permute.xlu1 %1293  ;;  %v1112_v3 = vsel %vm934_vm6, %v2504_v0, 0.0 }
 0x342   : > { %1113 = vadd.xlane.f32.xlu0 %v1112_v3  ;;  %2402 = vmatpush3.msra.mxu0 %v1123_v61  ;;  %v1463_v4 = vpop.permute.xlu0 %1462 }
 0x343   : > { %2406 = vmatprep.subr.mxu1 %v1294_v2  ;;  %2413 = vmatprep.subr.mxu0 %v1463_v4 }
 0x347   : > { %v2506_v5 = vpop.eup %2505 }
 0x348   : > { %v2508_v6 = vpop.eup %2507  ;;  %v1284_v7 = vsel %vm934_vm6, %v2506_v5, 0.0 }
 0x349   : > { %1285 = vadd.xlane.f32.xlu1 %v1284_v7  ;;  %v1281_v8 = vsel %vm934_vm6, %v2508_v6, 0.0 }
 0x34a   : > { %1282 = vadd.xlane.f32.xlu0 %v1281_v8 }
 0x34b   : > { %v2510_v9 = vpop.eup %2509 }
 0x34c   : > { %v2512_v10 = vpop.eup %2511  ;;  %v1453_v11 = vsel %vm934_vm6, %v2510_v9, 0.0 }
 0x34d   : > { %1454 = vadd.xlane.f32.xlu1 %v1453_v11  ;;  %v1450_v12 = vsel %vm934_vm6, %v2512_v10, 0.0 }
 0x34e   : > { %1451 = vadd.xlane.f32.xlu0 %v1450_v12 }
 0x35e   : > { %1291 = vrot.lane.b32.xlu1 %v2687_v20, %s2557_s20 }
 0x364   : > { %1460 = vrot.lane.b32.xlu0 %v2687_v20, %s2558_s21  ;;  %s608_s21 = scalar_lea.vmem %s2836_s10, %s2841_s26 }
 0x38a   : > { %v952_v13 = vpop.xlane.xlu1 %951 }
 0x38b   : > { %2513 = vrcp.f32 %v952_v13  ;;  %v949_v14 = vpop.xlane.xlu0 %948 }
 0x38c   : > { %2515 = vrcp.f32 %v949_v14 }
 0x398   : > { %v2514_v15 = vpop.eup %2513 }
 0x399   : > { %v2516_v16 = vpop.eup %2515  ;;  %v956_v17 = vmul.f32 %v2514_v15, %v2743_v40 }
 0x39a   : > { %v955_v18 = vmul.f32 %v2516_v16, %v2745_v41  ;;  %v1709_v16 = vld [vmem:[%s597_s19 + $0x8] sm:$0xff] }
 0x39c   : > { %2396 = vmatprep.mubr.msk.f32.mxu1 %vm934_vm6, %v955_v18 }
 0x39d   : > { %2397 = vmatmul.mubr.msk.f32.vlgmr.msra.gmra.mxu1 %vm934_vm6, %v956_v17  ;;  %v1708_v17 = vld [vmem:[%s597_s19] sm:$0xff] }
 0x39e   : > { %2407 = vmatpush3.msra.mxu1 %v1294_v2 }
 0x3ca   : > { %v1117_v21 = vpop.xlane.xlu1 %1116 }
 0x3cb   : > { %2517 = vrcp.f32 %v1117_v21  ;;  %v1114_v22 = vpop.xlane.xlu0 %1113 }
 0x3cc   : > { %2519 = vrcp.f32 %v1114_v22 }
 0x3d2   : > { %v1286_v20 = vpop.xlane.xlu1 %1285 }
 0x3d3   : > { %2521 = vrcp.f32 %v1286_v20  ;;  %v1283_v23 = vpop.xlane.xlu0 %1282 }
 0x3d4   : > { %2523 = vrcp.f32 %v1283_v23 }
 0x3d6   : > { %v1455_v24 = vpop.xlane.xlu1 %1454 }
 0x3d7   : > { %2525 = vrcp.f32 %v1455_v24  ;;  %v1452_v25 = vpop.xlane.xlu0 %1451 }
 0x3d8   : > { %v2518_v26 = vpop.eup %2517  ;;  %2527 = vrcp.f32 %v1452_v25 }
 0x3d9   : > { %v2520_v27 = vpop.eup %2519  ;;  %v1121_v28 = vmul.f32 %v2518_v26, %v2502_v63 }
 0x3da   : > { %v1292_v29 = vpop.permute.xlu1 %1291  ;;  %v1120_v30 = vmul.f32 %v2520_v27, %v2504_v0 }
 0x3db   : > { %2408 = vmatprep.subr.mxu1 %v1292_v29  ;;  %v1461_v31 = vpop.permute.xlu0 %1460 }
 0x3dc   : > { %2403 = vmatprep.mubr.msk.f32.mxu0 %vm934_vm6, %v1120_v30  ;;  %2409 = vmatpush3.msra.mxu1 %v1292_v29 }
 0x3dd   : > { %2404 = vmatmul.mubr.msk.f32.vlgmr.msra.gmra.mxu0 %vm934_vm6, %v1121_v28  ;;  %2420 = vmatprep.subr.mxu1 %v1607_v45 }
 0x3de   : > { %2414 = vmatpush3.msra.mxu0 %v1463_v4 }
 0x3df   : > { %2415 = vmatprep.subr.mxu0 %v1461_v31 }
 0x3e0   : > { %v2522_v32 = vpop.eup %2521  ;;  %2416 = vmatpush3.msra.mxu0 %v1461_v31 }
 0x3e1   : > { %v2524_v33 = vpop.eup %2523  ;;  %v1290_v34 = vmul.f32 %v2522_v32, %v2506_v5  ;;  %2439 = vmatprep.subr.mxu0 %v1709_v16 }
 0x3e2   : > { %v1289_v35 = vmul.f32 %v2524_v33, %v2508_v6 }
 0x3e4   : > { %v2526_v36 = vpop.eup %2525  ;;  %2410 = vmatprep.mubr.msk.f32.mxu1 %vm934_vm6, %v1289_v35 }
 0x3e5   : > { %v2528_v37 = vpop.eup %2527  ;;  %2411 = vmatmul.mubr.msk.f32.vlgmr.msra.gmra.mxu1 %vm934_vm6, %v1290_v34  ;;  %v1459_v38 = vmul.f32 %v2526_v36, %v2510_v9  ;;  %v618_v34 = vld [vmem:[%s2838_s12] sm:$0xff] }
 0x3e6   : > { %v1458_v39 = vmul.f32 %v2528_v37, %v2512_v10  ;;  %2421 = vmatpush3.msra.mxu1 %v1607_v45  ;;  %v619_v37 = vld [vmem:[%s2838_s12 + $0x8] sm:$0xff] }
 0x3e7   : > { %2422 = vmatprep.subr.mxu1 %v1606_v46 }
 0x3e8   : > { %2417 = vmatprep.mubr.msk.f32.mxu0 %vm934_vm6, %v1458_v39  ;;  %2423 = vmatpush3.msra.mxu1 %v1606_v46  ;;  %v1891_v39 = vld [vmem:[%s605_s14] sm:$0xff] }
 0x3e9   : > { %2418 = vmatmul.mubr.msk.f32.vlgmr.msra.gmra.mxu0 %vm934_vm6, %v1459_v38  ;;  %2424 = vmatprep.subr.mxu1 %v1605_v48  ;;  %v1892_v38 = vld [vmem:[%s605_s14 + $0x8] sm:$0xff] }
 0x3ea   : > { %2425 = vmatpush3.msra.mxu1 %v1605_v48  ;;  %2440 = vmatpush3.msra.mxu0 %v1709_v16 }
 0x3eb   : > { %2426 = vmatprep.subr.mxu1 %v1604_v50  ;;  %2441 = vmatprep.subr.mxu0 %v1708_v17 }
 0x3ec   : > { %2427 = vmatpush3.msra.mxu1 %v1604_v50  ;;  %2442 = vmatpush3.msra.mxu0 %v1708_v17 }
 0x3ed   : > { %2428 = vmatprep.subr.mxu1 %v1603_v51 }
 0x3ee   : > { %2429 = vmatpush3.msra.mxu1 %v1603_v51 }
 0x3ef   : > { %2430 = vmatprep.subr.mxu1 %v1602_v52 }
 0x3f0   : > { %2431 = vmatpush3.msra.mxu1 %v1602_v52 }
 0x3f1   : > { %2432 = vmatprep.subr.mxu1 %v1601_v53 }
 0x3f2   : > { %2433 = vmatpush3.msra.mxu1 %v1601_v53 }
 0x3f3   : > { %2434 = vmatprep.subr.mxu1 %v1600_v54 }
 0x3f4   : > { %2435 = vmatpush3.msra.mxu1 %v1600_v54 }
 0x45d   : > { %v2398_v41 = vpop.f32.mrf.mxu1 }
 0x45f   : > { %v1029_v19 = vpop.f32.mrf.mxu1 }
 0x49d   : > { %v2405_v40 = vpop.f32.mrf.mxu0 }
 0x49e   : > { %1551 = vrot.lane.b32.xlu0 %v2405_v40, %s2559_s22  ;;  %v2265_v40 = vld [vmem:[%s600_s17] ss:$0 sm:$0xff] }
 0x49f   : > { %v1200_v42 = vpop.f32.mrf.mxu0 }
 0x4a0   : > { %1549 = vrot.lane.b32.xlu1 %v1200_v42, %s2559_s22  ;;  %s592_s22 = scalar_lea.vmem %s2832_s6, %s2841_s26 }
 0x4a1   : > { %v2258_v18 = vld [vmem:[%s592_s22] ss:$0 sm:$0xff] }
 0x4a5   : > { %v2412_v43 = vpop.f32.mrf.mxu1 }
 0x4a6   : > { %1559 = vrot.lane.b32.xlu0 %v2412_v43, %s2560_s23 }
 0x4a7   : > { %v1369_v44 = vpop.f32.mrf.mxu1 }
 0x4a8   : > { %1557 = vrot.lane.b32.xlu1 %v1369_v44, %s2560_s23 }
 0x4a9   : > { %v2419_v47 = vpop.f32.mrf.mxu0 }
 0x4aa   : > { %1567 = vrot.lane.b32.xlu0 %v2419_v47, %s2561_s30 }
 0x4ab   : > { %v1538_v49 = vpop.f32.mrf.mxu0 }
 0x4ac   : > { %1565 = vrot.lane.b32.xlu1 %v1538_v49, %s2561_s30 }
 0x510   : > { %v1552_v55 = vpop.permute.xlu0 %1551 }
 0x511   : > { %v1572_v59 = vsel %vm934_vm6, %v2398_v41, %v1552_v55 }
 0x512   : > { %v1550_v56 = vpop.permute.xlu1 %1549 }
 0x513   : > { %v1571_v63 = vsel %vm934_vm6, %v1029_v19, %v1550_v56  ;;  %v2272_v56 = vld [vmem:[%s608_s21] ss:$0 sm:$0xff] }
 0x518   : > { %v1560_v57 = vpop.permute.xlu0 %1559 }
 0x519   : > { %v1575_v61 = vsel %vm1573_vm13, %v1572_v59, %v1560_v57 }
 0x51a   : > { %v1558_v58 = vpop.permute.xlu1 %1557 }
 0x51b   : > { %v1574_v1 = vsel %vm1573_vm13, %v1571_v63, %v1558_v58 }
 0x51c   : > { %v1568_v62 = vpop.permute.xlu0 %1567 }
 0x51d   : > { %v1578_v0 = vsel %vm1576_vm14, %v1575_v61, %v1568_v62 }
 0x51e   : > { %v1587_v2 = vadd.f32 %v2255_v60, %v1578_v0  ;;  %v1566_v3 = vpop.permute.xlu1 %1565 }
 0x51f   : > { %v1577_v4 = vsel %vm1576_vm14, %v1574_v1, %v1566_v3 }
 0x520   : > { %v1591_v5 = vmin.f32 %v1587_v2, 0.0  ;;  %v1586_v6 = vadd.f32 %v2255_v60, %v1577_v4  ;;  %vm1589_vm0 = vcmp.gt.f32.partialorder %v1587_v2, 0.0 }
 0x522   : > { %v1594_v7 = vmul.f32 1.442695, %v1591_v5  ;;  %v1590_v8 = vmin.f32 %v1586_v6, 0.0  ;;  %vm1588_vm15 = vcmp.gt.f32.partialorder %v1586_v6, 0.0 }
 0x524   : > { %2529 = vpow2.f32 %v1594_v7  ;;  %v1592_v9 = vmul.f32 1.442695, %v1590_v8 }
 0x526   : > { %2531 = vpow2.f32 %v1592_v9 }
 0x531   : > { %v2530_v10 = vpop.eup %2529 }
 0x532   : > { %v2257_v12 = vadd.f32 -1.0, %v2530_v10 }
 0x533   : > { %v2532_v11 = vpop.eup %2531 }
 0x534   : > { %v2256_v13 = vadd.f32 -1.0, %v2532_v11  ;;  %v1599_v15 = vsel %vm1589_vm0, %v1587_v2, %v2257_v12 }
 0x536   : > { %v1598_v14 = vsel %vm1588_vm15, %v1586_v6, %v2256_v13 }
 0x537   : > { %2436 = vmatprep.mubr.msk.f32.mxu1 %vm711_vm1, %v1598_v14 }
 0x538   : > { %2437 = vmatmul.mubr.msk.f32.vlgmr.msra.gmra.mxu1 %vm711_vm1, %v1599_v15 }
 0x5f8   : > { %v2438_v21 = vpop.f32.mrf.mxu1 }
 0x5f9   : > { %v1693_v22 = vadd.f32 %v2438_v21, %v2258_v18 }
 0x5fa   : > { %v1687_v20 = vpop.f32.mrf.mxu1 }
 0x5fb   : > { %v1699_v23 = vmin.f32 %v1693_v22, 0.0  ;;  %v1688_v24 = vadd.f32 %v2258_v18, %v1687_v20  ;;  %vm1697_vm2 = vcmp.gt.f32.partialorder %v1693_v22, 0.0 }
 0x5fd   : > { %v1702_v25 = vmul.f32 1.442695, %v1699_v23  ;;  %v1698_v26 = vmin.f32 %v1688_v24, 0.0  ;;  %vm1696_vm1 = vcmp.gt.f32.partialorder %v1688_v24, 0.0 }
 0x5ff   : > { %2533 = vpow2.f32 %v1702_v25  ;;  %v1700_v27 = vmul.f32 1.442695, %v1698_v26 }
 0x601   : > { %2535 = vpow2.f32 %v1700_v27 }
 0x60c   : > { %v2534_v28 = vpop.eup %2533 }
 0x60d   : > { %v2262_v30 = vadd.f32 -1.0, %v2534_v28 }
 0x60e   : > { %v2536_v29 = vpop.eup %2535 }
 0x60f   : > { %v2261_v31 = vadd.f32 -1.0, %v2536_v29  ;;  %v1707_v33 = vsel %vm1697_vm2, %v1693_v22, %v2262_v30 }
 0x611   : > { %v1706_v32 = vsel %vm1696_vm1, %v1688_v24, %v2261_v31 }
 0x612   : > { %2443 = vmatprep.mubr.msk.f32.mxu0 %vm934_vm6, %v1706_v32 }
 0x613   : > { %2444 = vmatmul.mubr.msk.f32.vlgmr.msra.gmra.mxu0 %vm934_vm6, %v1707_v33 }
 0x614   : > { %2450 = vmatprep.mubr.msk.f32.mxu0 %vm934_vm6, %v618_v34 }
 0x6d3   : > { %v2445_v35 = vpop.f32.mrf.mxu0 }
 0x6d4   : > { %2446 = vmatprep.subr.mxu0 %v2445_v35 }
 0x6d5   : > { %v1782_v36 = vpop.f32.mrf.mxu0  ;;  %2447 = vmatpush3.msra.mxu0 %v2445_v35 }
 0x6d6   : > { %2448 = vmatprep.subr.mxu0 %v1782_v36 }
 0x6d7   : > { %2449 = vmatpush3.msra.mxu0 %v1782_v36 }
 0x6d8   : > { %2451 = vmatmul.mubr.msk.f32.vlgmr.msra.gmra.mxu0 %vm934_vm6, %v619_v37  ;;  %2453 = vmatprep.subr.mxu0 %v1892_v38 }
 0x6d9   : > { %2454 = vmatpush3.msra.mxu0 %v1892_v38 }
 0x6da   : > { %2455 = vmatprep.subr.mxu0 %v1891_v39 }
 0x6db   : > { %2456 = vmatpush3.msra.mxu0 %v1891_v39 }
 0x798   : > { %v2452_v41 = vpop.f32.mrf.mxu0 }
 0x799   : > { %v1876_v42 = vadd.f32 %v2452_v41, %v2265_v40 }
 0x79a   : > { %v1870_v19 = vpop.f32.mrf.mxu0 }
 0x79b   : > { %v1882_v43 = vmin.f32 %v1876_v42, 0.0  ;;  %v1871_v44 = vadd.f32 %v2265_v40, %v1870_v19  ;;  %vm1880_vm4 = vcmp.gt.f32.partialorder %v1876_v42, 0.0 }
 0x79d   : > { %v1885_v45 = vmul.f32 1.442695, %v1882_v43  ;;  %v1881_v46 = vmin.f32 %v1871_v44, 0.0  ;;  %vm1879_vm3 = vcmp.gt.f32.partialorder %v1871_v44, 0.0 }
 0x79f   : > { %2537 = vpow2.f32 %v1885_v45  ;;  %v1883_v47 = vmul.f32 1.442695, %v1881_v46 }
 0x7a1   : > { %2539 = vpow2.f32 %v1883_v47 }
 0x7ac   : > { %v2538_v48 = vpop.eup %2537 }
 0x7ad   : > { %v2269_v50 = vadd.f32 -1.0, %v2538_v48 }
 0x7ae   : > { %v2540_v49 = vpop.eup %2539 }
 0x7af   : > { %v2268_v51 = vadd.f32 -1.0, %v2540_v49  ;;  %v1890_v53 = vsel %vm1880_vm4, %v1876_v42, %v2269_v50 }
 0x7b1   : > { %v1889_v52 = vsel %vm1879_vm3, %v1871_v44, %v2268_v51 }
 0x7b2   : > { %2457 = vmatprep.mubr.msk.f32.mxu0 %vm934_vm6, %v1889_v52 }
 0x7b3   : > { %2458 = vmatmul.mubr.msk.f32.vlgmr.msra.gmra.mxu0 %vm934_vm6, %v1890_v53 }
 0x7b4   : > { %2464 = vmatprep.mubr.msk.f32.mxu0 %vm934_vm6, %v618_v34 }
 0x873   : > { %v2459_v54 = vpop.f32.mrf.mxu0 }
 0x874   : > { %2460 = vmatprep.subr.mxu0 %v2459_v54 }
 0x875   : > { %v1965_v55 = vpop.f32.mrf.mxu0  ;;  %2461 = vmatpush3.msra.mxu0 %v2459_v54 }
 0x876   : > { %2462 = vmatprep.subr.mxu0 %v1965_v55 }
 0x877   : > { %2463 = vmatpush3.msra.mxu0 %v1965_v55 }
 0x878   : > { %2465 = vmatmul.mubr.msk.f32.vlgmr.msra.gmra.mxu0 %vm934_vm6, %v619_v37 }
 0x938   : > { %v2466_v57 = vpop.f32.mrf.mxu0 }
 0x939   : > { %v2053_v58 = vadd.f32 %v2466_v57, %v2272_v56 }
 0x93a   : > { %v2047_v59 = vpop.f32.mrf.mxu0 }
 0x93b   : > { %2057 = vst.msk [vmem:[%s613_s24 + $0x8] sm:$0xff] %vm934_vm6, %v2053_v58  ;;  %v2048_v60 = vadd.f32 %v2272_v56, %v2047_v59 }
 0x93d   : > { %2056 = vst.msk [vmem:[%s613_s24] sm:$0xff] %vm934_vm6, %v2048_v60 }
 0x93e PF: > { %s23_s25 = sadd.s32 1, %s2547_s25  }
 0x93f   : > { %p20_p4 = scmp.ge.s32.totalorder %s23_s25, 5  }
 0x941   :  { %22 = sbr.rel (!%p20_p4) target bundleno = 1 (0x1), region = 132 }

</bundles_post_ra>
